<compile_context>
chip_gen: v5e
topology: v5e:2x2
jax: 0.10.0
libtpu: 0.0.40
codegen_flags: <defaults>
</compile_context>

<pallas_src>
import math

import jax
import jax.numpy as jnp
import numpy as np
from jax.experimental import pallas as pl
from jax.experimental.pallas import tpu as pltpu

PI2 = 2.0 * math.pi          # pi2 in the torch source (pi2repuse = True path)
ZITTER = 1e-4                # default zitter in eval_smkernel_batch


def _round_up(x, m):
    return ((x + m - 1) // m) * m


def _plan(nb, ndata, ndim, nchannel, nmix, hdims):
    """Pick (Bb, ta, ndata_p, nb_pad, vmem_limit, use_bf16) per TPU generation."""
    try:
        kind = jax.devices()[0].device_kind.lower()
    except Exception:  # pragma: no cover - defensive
        kind = ""
    is_v7 = "v7" in kind
    is_v6 = "v6" in kind
    vmem_limit = (40 if is_v7 else 100) * 1024 * 1024
    budget = int(0.75 * vmem_limit)
    f32 = 4
    ndim1 = ndim + 1

    def usage(bb, ta, nd_p):
        pair = 4 * bb * nmix * ta * nd_p * f32             # diff / E / G / matmul staging
        cols = (6 + 2 * ndim) * bb * nmix * nd_p * f32     # cs, cos, sin, wc, ws, W, e_d
        rows = (6 + 2 * ndim) * bb * nmix * ta * f32
        inputs = 2 * 2 * bb * ndim1 * (nd_p + ta) * f32    # double-buffered xa blocks (x2 specs)
        fc1 = 3 * bb * ta * hdims * f32
        weights = 2 * f32 * (nchannel * hdims * hdims + 3 * hdims * hdims
                             + (nmix + 3) * hdims + nchannel * nmix) + (1 << 16)
        return pair + cols + rows + inputs + fc1 + weights

    # row tile over the 'a' axis of the pairwise stage
    if ndata <= 128 or usage(1, ndata, ndata) <= budget:
        ta, nd_p = ndata, ndata
    else:
        ta = 512
        while ta > 128 and usage(1, ta, _round_up(ndata, ta)) > budget:
            ta //= 2
        nd_p = _round_up(ndata, ta)

    # batch block: as large as the budget allows, but keep >=2 batch blocks when nb >= 2
    bb = 1
    bb_cap = min(64, max(1, (nb + 1) // 2))
    while bb < bb_cap and usage(bb + 1, ta, nd_p) <= budget:
        bb += 1
    nb_pad = _round_up(nb, bb)

    use_bf16 = (is_v6 or is_v7) and nd_p >= 256
    return bb, ta, nd_p, nb_pad, vmem_limit, use_bf16


def _make_kernel(Bb, ta, ndata, ndata_p, ndim, nmix, nchannel, hdims, use_bf16):
    def kernel(xa_ref, xr_ref, mu_ref, istd_ref, w1f_ref, w1y_ref, b1_ref,
               w2_ref, b2_ref, w3_ref, b3_ref, w4_ref, b4_ref, w5_ref, b5_ref,
               out_ref, hsum_ref):
        k = pl.program_id(1)              # channel
        j = pl.program_id(2)              # row tile
        nk = pl.num_programs(1)
        nj = pl.num_programs(2)

        @pl.when(jnp.logical_and(k == 0, j == 0))
        def _init():
            hsum_ref[...] = jnp.zeros_like(hsum_ref)

        xa = xa_ref[...]                  # (Bb, 1, ndim+1, ndata_p)  columns (full)
        xr = xr_ref[...]                  # (Bb, 1, ndim+1, ta)       rows (tile j)
        mu = mu_ref[...]                  # (ndim, nmix, 1)
        istd = istd_ref[...]              # (ndim, nmix, 1), pre-scaled by pi2*sqrt(0.5)

        yk_c = xa[:, 0, ndim, :]          # (Bb, ndata_p)   y for this channel (columns)
        yk_r = xr[:, 0, ndim, :]          # (Bb, ta)        y for this channel (rows)

        # per-mixture projections (O(N) work)
        ec, er = [], []
        cs_c = jnp.zeros((Bb, nmix, ndata_p), jnp.float32)
        cs_r = jnp.zeros((Bb, nmix, ta), jnp.float32)
        for d in range(ndim):
            xc_d = xa[:, 0, d, :][:, None, :]          # (Bb, 1, ndata_p)
            xr_d = xr[:, 0, d, :][:, None, :]          # (Bb, 1, ta)
            mu_d = mu[d][None, :, :]                   # (1, nmix, 1)
            is_d = istd[d][None, :, :]
            cs_c = cs_c + xc_d * mu_d
            cs_r = cs_r + xr_d * mu_d
            ec.append(xc_d * is_d)                     # (Bb, nmix, ndata_p)
            er.append(xr_d * is_d)                     # (Bb, nmix, ta)

        cosA_c = jnp.cos(PI2 * cs_c)
        sinA_c = jnp.sin(PI2 * cs_c)
        cosA_r = jnp.cos(PI2 * cs_r)
        sinA_r = jnp.sin(PI2 * cs_r)

        wc = cosA_c * yk_c[:, None, :]                 # (Bb, nmix, ndata_p)
        ws = sinA_c * yk_c[:, None, :]
        W = jnp.stack([wc, ws], axis=-1)               # (Bb, nmix, ndata_p, 2)

        # pairwise squared distance + Gaussian envelope (scale folded into istd)
        E = None
        for d in range(ndim):
            dd = er[d][:, :, :, None] - ec[d][:, :, None, :]   # (Bb, nmix, ta, ndata_p)
            E = dd * dd if E is None else E + dd * dd
        G = jnp.exp(-E)

        # c-reduction on the MXU: one batched matmul produces fc and fs together
        Gm = G.reshape(Bb * nmix, ta, ndata_p)
        Wm = W.reshape(Bb * nmix, ndata_p, 2)
        if use_bf16:
            Gm = Gm.astype(jnp.bfloat16)
            Wm = Wm.astype(jnp.bfloat16)
        fcfs = jnp.einsum('zac,zcj->zaj', Gm, Wm,
                          preferred_element_type=jnp.float32)  # (Bb*nmix, ta, 2)
        fcfs = fcfs.reshape(Bb, nmix, ta, 2)
        F = cosA_r * fcfs[..., 0] + sinA_r * fcfs[..., 1]      # (Bb, nmix, ta)

        # fc1 for this channel's rows (zitter*y folded into the y-column weight)
        Ft = jnp.swapaxes(F, 1, 2).reshape(Bb * ta, nmix)
        h1 = jnp.dot(Ft, w1f_ref[...], preferred_element_type=jnp.float32)
        h1 = h1.reshape(Bb, ta, hdims)
        h1 = h1 + yk_r[:, :, None] * w1y_ref[...][None]        # (Bb, ta, hdims)
        h1 = jnp.maximum(h1 + b1_ref[...][None], 0.0)
        if ndata_p != ndata:
            a_ids = jax.lax.broadcasted_iota(jnp.int32, (1, ta, 1), 1) + j * ta
            h1 = jnp.where(a_ids < ndata, h1, 0.0)
        part = jnp.sum(h1, axis=1)                             # (Bb, hdims)
        hsum_ref[k] = hsum_ref[k] + part

        # head MLP once all channels / row tiles of this batch block are accumulated
        @pl.when(jnp.logical_and(k == nk - 1, j == nj - 1))
        def _head():
            inv_n = 1.0 / float(ndata)
            acc = jnp.zeros((Bb, hdims), jnp.float32)
            for kk in range(nchannel):
                hk = hsum_ref[kk] * inv_n                      # channel-major hidden mean
                acc = acc + jnp.dot(hk, w2_ref[kk * hdims:(kk + 1) * hdims, :],
                                    preferred_element_type=jnp.float32)
            h2 = jnp.maximum(acc + b2_ref[...], 0.0)
            h3 = jnp.maximum(jnp.dot(h2, w3_ref[...],
                                     preferred_element_type=jnp.float32) + b3_ref[...], 0.0)
            h4 = jnp.maximum(jnp.dot(h3, w4_ref[...],
                                     preferred_element_type=jnp.float32) + b4_ref[...], 0.0)
            out = jnp.dot(h4, w5_ref[...],
                          preferred_element_type=jnp.float32) + b5_ref[...]
            out_ref[:, 0, :] = out

    return kernel


def transinvariant_mlp_forward(xc, yc, params):
    """xc: (nb, ndata, ndim, nchannel) f32, yc: (nb, ndata, nchannel) f32."""
    xc = jnp.asarray(xc, jnp.float32)
    yc = jnp.asarray(yc, jnp.float32)
    nb, ndata, ndim, nchannel = xc.shape
    mu = jnp.asarray(params["mu"], jnp.float32)
    inv_std = jnp.asarray(params["inv_std"], jnp.float32)
    nmix = mu.shape[0]
    hdims = params["w1"].shape[0]
    CH = nchannel * hdims
    CM = nchannel * nmix
    ndim1 = ndim + 1

    Bb, ta, ndata_p, nb_pad, vmem_limit, use_bf16 = _plan(
        nb, ndata, ndim, nchannel, nmix, hdims)

    # ---- host-side re-layout (O(N), tiny vs the O(N^2) kernel work) ----
    # xa[b, k, d, a] = xc[b, a, d, k] for d < ndim,  xa[b, k, ndim, a] = yc[b, a, k]
    x_t = jnp.transpose(xc, (0, 3, 2, 1))                     # (nb, nchannel, ndim, ndata)
    y_t = jnp.transpose(yc, (0, 2, 1))[:, :, None, :]         # (nb, nchannel, 1, ndata)
    xa = jnp.concatenate([x_t, y_t], axis=2)                  # (nb, nchannel, ndim+1, ndata)
    xa = jnp.pad(xa, ((0, nb_pad - nb), (0, 0), (0, 0), (0, ndata_p - ndata)))

    mu_in = mu.T[:, :, None]                                   # (ndim, nmix, 1)
    istd_in = (inv_std.T * (PI2 * math.sqrt(0.5)))[:, :, None]  # exp scale folded in

    w1 = jnp.asarray(params["w1"], jnp.float32)                # (hdims, nmix+1)
    w1f = w1[:, :nmix].T                                       # (nmix, hdims)
    # fold zitter*y (the diagonal term hitting every mixture) into the y-column weight
    w1y = (w1[:, nmix] + ZITTER * jnp.sum(w1[:, :nmix], axis=1))[None, :]   # (1, hdims)
    b1 = jnp.asarray(params["b1"], jnp.float32)[None, :]
    w2t = jnp.asarray(params["w2"], jnp.float32).T             # (CH, hdims)
    b2 = jnp.asarray(params["b2"], jnp.float32)[None, :]
    w3t = jnp.asarray(params["w3"], jnp.float32).T
    b3 = jnp.asarray(params["b3"], jnp.float32)[None, :]
    w4t = jnp.asarray(params["w4"], jnp.float32).T
    b4 = jnp.asarray(params["b4"], jnp.float32)[None, :]
    w5t = jnp.asarray(params["w5"], jnp.float32).T             # (hdims, CM)
    b5 = jnp.asarray(params["b5"], jnp.float32)[None, :]

    nbb = nb_pad // Bb
    nta = ndata_p // ta
    full = lambda shape: pl.BlockSpec(shape, lambda i, k, j: tuple(0 for _ in shape))

    out = pl.pallas_call(
        _make_kernel(Bb, ta, ndata, ndata_p, ndim, nmix, nchannel, hdims, use_bf16),
        out_shape=jax.ShapeDtypeStruct((nb_pad, 1, CM), jnp.float32),
        grid_spec=pltpu.PrefetchScalarGridSpec(
            num_scalar_prefetch=0,
            grid=(nbb, nchannel, nta),
            in_specs=[
                pl.BlockSpec((Bb, 1, ndim1, ndata_p), lambda i, k, j: (i, k, 0, 0)),
                pl.BlockSpec((Bb, 1, ndim1, ta),      lambda i, k, j: (i, k, 0, j)),
                full((ndim, nmix, 1)),     # mu
                full((ndim, nmix, 1)),     # inv_std (pre-scaled)
                full((nmix, hdims)),       # fc1 feature weights
                full((1, hdims)),          # fc1 y-column (+ zitter fold)
                full((1, hdims)),          # b1
                full((CH, hdims)),         # w2^T
                full((1, hdims)),          # b2
                full((hdims, hdims)),      # w3^T
                full((1, hdims)),          # b3
                full((hdims, hdims)),      # w4^T
                full((1, hdims)),          # b4
                full((hdims, CM)),         # w5^T
                full((1, CM)),             # b5
            ],
            out_specs=pl.BlockSpec((Bb, 1, CM), lambda i, k, j: (i, 0, 0)),
            scratch_shapes=[pltpu.VMEM((nchannel, Bb, hdims), jnp.float32)],
        ),
        compiler_params=pltpu.CompilerParams(
            dimension_semantics=("parallel", "arbitrary", "arbitrary"),
            vmem_limit_bytes=int(vmem_limit)),
    )(xa, xa, mu_in, istd_in, w1f, w1y, b1, w2t, b2, w3t, b3, w4t, b4, w5t, b5)

    return out[:nb, 0, :].reshape(nb, nchannel, nmix)


# ----------------------- pure-JAX reference (for checking) -----------------------
def reference_forward(xc, yc, params):
    hp = jax.lax.Precision.HIGHEST
    mu, inv_std = params["mu"], params["inv_std"]
    nb, ndata, ndim, nch = xc.shape
    nmix = mu.shape[0]

    xc_ = xc[:, None]                                     # (nb,1,ndata,ndim,nch)
    mu_ = mu[None, :, None, :, None]
    istd_ = inv_std[None, :, None, :, None]
    exp_xc = xc_ * istd_                                  # (nb,nm,ndata,ndim,nch)
    cos_xc = xc_ * mu_
    e2 = jnp.sum(exp_xc ** 2, axis=-2)                    # (nb,nm,ndata,nch)
    cross = jnp.einsum('bmadk,bmcdk->bmack', exp_xc, exp_xc, precision=hp)
    E = e2[:, :, :, None, :] + e2[:, :, None, :, :] - 2.0 * cross
    cs = jnp.sum(cos_xc, axis=-2)
    C = cs[:, :, :, None, :] - cs[:, :, None, :, :]
    outs = jnp.exp(-0.5 * PI2 ** 2 * E) * jnp.cos(PI2 * C)
    outs = jnp.transpose(outs, (0, 2, 3, 4, 1))           # (nb,ndata,ndata,nch,nm)
    outs = outs + ZITTER * jnp.eye(ndata)[None, :, :, None, None]
    feature = jnp.sum(outs * yc[:, None, :, :, None], axis=2)   # (nb,ndata,nch,nm)
    transinv = jnp.concatenate([feature, yc[..., None]], axis=-1)

    def lin(x, w, b):
        return jnp.dot(x, w.T, precision=hp) + b

    h = jax.nn.relu(lin(transinv, params["w1"], params["b1"]))
    h = jnp.mean(h, axis=1).reshape(nb, -1)
    h = jax.nn.relu(lin(h, params["w2"], params["b2"]))
    h = jax.nn.relu(lin(h, params["w3"], params["b3"]))
    h = jax.nn.relu(lin(h, params["w4"], params["b4"]))
    out = lin(h, params["w5"], params["b5"])
    return out.reshape(nb, nch, nmix)


# ----------------------- deterministic parameter init -----------------------
def xavier_uniform(key, out_f, in_f):
    a = math.sqrt(6.0 / (in_f + out_f))
    return jax.random.uniform(key, (out_f, in_f), jnp.float32, -a, a)


def bias_uniform(key, out_f, in_f):
    a = 1.0 / math.sqrt(in_f)
    return jax.random.uniform(key, (out_f,), jnp.float32, -a, a)


if __name__ == "__main__":
    # small shapes consistent with the module
    nb, ndata, ndim, nchannel = 2, 16, 2, 2
    nmix, hdims = 3, 16

    key = jax.random.PRNGKey(0)
    keys = jax.random.split(key, 16)

    xc = jax.random.normal(keys[0], (nb, ndata, ndim, nchannel), jnp.float32)
    yc = jax.random.normal(keys[1], (nb, ndata, nchannel), jnp.float32)

    params = {
        # SM-kernel params (param_list = [mu, inv_std, None, None] -> logits None branch)
        "mu": jax.random.uniform(keys[2], (nmix, ndim), jnp.float32, 0.0, 1.0),
        "inv_std": jax.random.uniform(keys[3], (nmix, ndim), jnp.float32, 0.05, 0.3),
        # MLP params (torch Linear convention: weight (out, in))
        "w1": xavier_uniform(keys[4], hdims, nmix + 1),
        "b1": bias_uniform(keys[5], hdims, nmix + 1),
        "w2": xavier_uniform(keys[6], hdims, hdims * nchannel),
        "b2": bias_uniform(keys[7], hdims, hdims * nchannel),
        "w3": xavier_uniform(keys[8], hdims, hdims),
        "b3": bias_uniform(keys[9], hdims, hdims),
        "w4": xavier_uniform(keys[10], hdims, hdims),
        "b4": bias_uniform(keys[11], hdims, hdims),
        "w5": xavier_uniform(keys[12], nmix * nchannel, hdims),
        "b5": bias_uniform(keys[13], nmix * nchannel, hdims),
    }

    out = transinvariant_mlp_forward(xc, yc, params)
    out = jax.block_until_ready(out)

    ref = jax.block_until_ready(reference_forward(xc, yc, params))
    np.testing.assert_allclose(np.asarray(out), np.asarray(ref),
                               rtol=1e-2, atol=1e-2)

    assert out.shape == (nb, nchannel, nmix)
    print("KERNEL_OK")
</pallas_src>

<mosaic_0001>
module attributes {stable_mosaic.version = 11 : i64} {
  func.func @kernel(%arg0: i32, %arg1: i32, %arg2: i32, %arg3: memref<1x1x3x16xf32, #tpu.memory_space<vmem>>, %arg4: memref<1x1x3x16xf32, #tpu.memory_space<vmem>>, %arg5: memref<2x3x1xf32, #tpu.memory_space<vmem>>, %arg6: memref<2x3x1xf32, #tpu.memory_space<vmem>>, %arg7: memref<3x16xf32, #tpu.memory_space<vmem>>, %arg8: memref<1x16xf32, #tpu.memory_space<vmem>>, %arg9: memref<1x16xf32, #tpu.memory_space<vmem>>, %arg10: memref<32x16xf32, #tpu.memory_space<vmem>>, %arg11: memref<1x16xf32, #tpu.memory_space<vmem>>, %arg12: memref<16x16xf32, #tpu.memory_space<vmem>>, %arg13: memref<1x16xf32, #tpu.memory_space<vmem>>, %arg14: memref<16x16xf32, #tpu.memory_space<vmem>>, %arg15: memref<1x16xf32, #tpu.memory_space<vmem>>, %arg16: memref<16x6xf32, #tpu.memory_space<vmem>>, %arg17: memref<1x6xf32, #tpu.memory_space<vmem>>, %arg18: memref<1x1x6xf32, #tpu.memory_space<vmem>>, %arg19: memref<2x1x16xf32, #tpu.memory_space<vmem>>) attributes {dimension_semantics = [#tpu.dimension_semantics<parallel>, #tpu.dimension_semantics<arbitrary>, #tpu.dimension_semantics<arbitrary>], iteration_bounds = array<i64: 2, 2, 1>, scalar_prefetch = 0 : i64, scratch_operands = 1 : i64, tpu.core_type = #tpu.core_type<tc>, window_params = [{transform_indices = @transform_0, window_bounds = array<i64: 1, 1, 3, 16>}, {transform_indices = @transform_1, window_bounds = array<i64: 1, 1, 3, 16>}, {pipeline_mode = #tpu.pipeline_mode<synchronous>, transform_indices = @transform_2, window_bounds = array<i64: 2, 3, 1>}, {pipeline_mode = #tpu.pipeline_mode<synchronous>, transform_indices = @transform_3, window_bounds = array<i64: 2, 3, 1>}, {pipeline_mode = #tpu.pipeline_mode<synchronous>, transform_indices = @transform_4, window_bounds = array<i64: 3, 16>}, {pipeline_mode = #tpu.pipeline_mode<synchronous>, transform_indices = @transform_5, window_bounds = array<i64: 1, 16>}, {pipeline_mode = #tpu.pipeline_mode<synchronous>, transform_indices = @transform_6, window_bounds = array<i64: 1, 16>}, {pipeline_mode = #tpu.pipeline_mode<synchronous>, transform_indices = @transform_7, window_bounds = array<i64: 32, 16>}, {pipeline_mode = #tpu.pipeline_mode<synchronous>, transform_indices = @transform_8, window_bounds = array<i64: 1, 16>}, {pipeline_mode = #tpu.pipeline_mode<synchronous>, transform_indices = @transform_9, window_bounds = array<i64: 16, 16>}, {pipeline_mode = #tpu.pipeline_mode<synchronous>, transform_indices = @transform_10, window_bounds = array<i64: 1, 16>}, {pipeline_mode = #tpu.pipeline_mode<synchronous>, transform_indices = @transform_11, window_bounds = array<i64: 16, 16>}, {pipeline_mode = #tpu.pipeline_mode<synchronous>, transform_indices = @transform_12, window_bounds = array<i64: 1, 16>}, {pipeline_mode = #tpu.pipeline_mode<synchronous>, transform_indices = @transform_13, window_bounds = array<i64: 16, 6>}, {pipeline_mode = #tpu.pipeline_mode<synchronous>, transform_indices = @transform_14, window_bounds = array<i64: 1, 6>}, {transform_indices = @transform_15, window_bounds = array<i64: 1, 1, 6>}]} {
    %c0_i32 = arith.constant 0 : i32
    %0 = arith.cmpi eq, %arg1, %c0_i32 : i32
    %c0_i32_0 = arith.constant 0 : i32
    %1 = arith.cmpi eq, %arg2, %c0_i32_0 : i32
    %2 = arith.andi %0, %1 : i1
    %3 = arith.extui %2 : i1 to i32
    %c0_i32_1 = arith.constant 0 : i32
    %4 = arith.cmpi ne, %3, %c0_i32_1 : i32
    scf.if %4 {
      %cst_37 = arith.constant 0.000000e+00 : f32
      %147 = vector.broadcast %cst_37 : f32 to vector<2x1x16xf32>
      %c0_38 = arith.constant 0 : index
      %c0_39 = arith.constant 0 : index
      %c0_40 = arith.constant 0 : index
      %148 = vector.load %arg19[%c0_38, %c0_39, %c0_40] : memref<2x1x16xf32, #tpu.memory_space<vmem>>, vector<2x1x16xf32>
      tpu.vector_store %arg19[%c0_38, %c0_39, %c0_40], %147 {strides = array<i32>} : memref<2x1x16xf32, #tpu.memory_space<vmem>>, vector<2x1x16xf32>,
    } else {
    }
    %c0 = arith.constant 0 : index
    %c0_2 = arith.constant 0 : index
    %c0_3 = arith.constant 0 : index
    %c0_4 = arith.constant 0 : index
    %5 = vector.load %arg3[%c0, %c0_2, %c0_3, %c0_4] : memref<1x1x3x16xf32, #tpu.memory_space<vmem>>, vector<1x1x3x16xf32>
    %c0_5 = arith.constant 0 : index
    %c0_6 = arith.constant 0 : index
    %c0_7 = arith.constant 0 : index
    %c0_8 = arith.constant 0 : index
    %6 = vector.load %arg4[%c0_5, %c0_6, %c0_7, %c0_8] : memref<1x1x3x16xf32, #tpu.memory_space<vmem>>, vector<1x1x3x16xf32>
    %c0_9 = arith.constant 0 : index
    %c0_10 = arith.constant 0 : index
    %c0_11 = arith.constant 0 : index
    %7 = vector.load %arg5[%c0_9, %c0_10, %c0_11] : memref<2x3x1xf32, #tpu.memory_space<vmem>>, vector<2x3x1xf32>
    %c0_12 = arith.constant 0 : index
    %c0_13 = arith.constant 0 : index
    %c0_14 = arith.constant 0 : index
    %8 = vector.load %arg6[%c0_12, %c0_13, %c0_14] : memref<2x3x1xf32, #tpu.memory_space<vmem>>, vector<2x3x1xf32>
    %9 = vector.extract_strided_slice %5 {offsets = [0, 0, 2, 0], sizes = [1, 1, 1, 16], strides = [1, 1, 1, 1]} : vector<1x1x3x16xf32> to vector<1x1x1x16xf32>
    %10 = vector.shape_cast %9 : vector<1x1x1x16xf32> to vector<1x16xf32>
    %11 = vector.extract_strided_slice %6 {offsets = [0, 0, 2, 0], sizes = [1, 1, 1, 16], strides = [1, 1, 1, 1]} : vector<1x1x3x16xf32> to vector<1x1x1x16xf32>
    %12 = vector.shape_cast %11 : vector<1x1x1x16xf32> to vector<1x16xf32>
    %cst = arith.constant 0.000000e+00 : f32
    %13 = vector.broadcast %cst : f32 to vector<1x3x16xf32>
    %cst_15 = arith.constant 0.000000e+00 : f32
    %14 = vector.broadcast %cst_15 : f32 to vector<1x3x16xf32>
    %15 = vector.extract_strided_slice %5 {offsets = [0, 0, 0, 0], sizes = [1, 1, 1, 16], strides = [1, 1, 1, 1]} : vector<1x1x3x16xf32> to vector<1x1x1x16xf32>
    %16 = vector.shape_cast %15 : vector<1x1x1x16xf32> to vector<1x16xf32>
    %17 = vector.shape_cast %16 : vector<1x16xf32> to vector<1x1x16xf32>
    %18 = vector.extract_strided_slice %6 {offsets = [0, 0, 0, 0], sizes = [1, 1, 1, 16], strides = [1, 1, 1, 1]} : vector<1x1x3x16xf32> to vector<1x1x1x16xf32>
    %19 = vector.shape_cast %18 : vector<1x1x1x16xf32> to vector<1x16xf32>
    %20 = vector.shape_cast %19 : vector<1x16xf32> to vector<1x1x16xf32>
    %21 = vector.extract_strided_slice %7 {offsets = [0, 0, 0], sizes = [1, 3, 1], strides = [1, 1, 1]} : vector<2x3x1xf32> to vector<1x3x1xf32>
    %22 = vector.shape_cast %21 : vector<1x3x1xf32> to vector<3x1xf32>
    %23 = vector.shape_cast %22 : vector<3x1xf32> to vector<1x3x1xf32>
    %24 = vector.extract_strided_slice %8 {offsets = [0, 0, 0], sizes = [1, 3, 1], strides = [1, 1, 1]} : vector<2x3x1xf32> to vector<1x3x1xf32>
    %25 = vector.shape_cast %24 : vector<1x3x1xf32> to vector<3x1xf32>
    %26 = vector.shape_cast %25 : vector<3x1xf32> to vector<1x3x1xf32>
    %27 = vector.broadcast %17 : vector<1x1x16xf32> to vector<1x3x16xf32>
    %28 = vector.broadcast %23 : vector<1x3x1xf32> to vector<1x3x16xf32>
    %29 = arith.mulf %27, %28 : vector<1x3x16xf32>
    %30 = arith.addf %13, %29 : vector<1x3x16xf32>
    %31 = vector.broadcast %20 : vector<1x1x16xf32> to vector<1x3x16xf32>
    %32 = vector.broadcast %23 : vector<1x3x1xf32> to vector<1x3x16xf32>
    %33 = arith.mulf %31, %32 : vector<1x3x16xf32>
    %34 = arith.addf %14, %33 : vector<1x3x16xf32>
    %35 = vector.broadcast %17 : vector<1x1x16xf32> to vector<1x3x16xf32>
    %36 = vector.broadcast %26 : vector<1x3x1xf32> to vector<1x3x16xf32>
    %37 = arith.mulf %35, %36 : vector<1x3x16xf32>
    %38 = vector.broadcast %20 : vector<1x1x16xf32> to vector<1x3x16xf32>
    %39 = vector.broadcast %26 : vector<1x3x1xf32> to vector<1x3x16xf32>
    %40 = arith.mulf %38, %39 : vector<1x3x16xf32>
    %41 = vector.extract_strided_slice %5 {offsets = [0, 0, 1, 0], sizes = [1, 1, 1, 16], strides = [1, 1, 1, 1]} : vector<1x1x3x16xf32> to vector<1x1x1x16xf32>
    %42 = vector.shape_cast %41 : vector<1x1x1x16xf32> to vector<1x16xf32>
    %43 = vector.shape_cast %42 : vector<1x16xf32> to vector<1x1x16xf32>
    %44 = vector.extract_strided_slice %6 {offsets = [0, 0, 1, 0], sizes = [1, 1, 1, 16], strides = [1, 1, 1, 1]} : vector<1x1x3x16xf32> to vector<1x1x1x16xf32>
    %45 = vector.shape_cast %44 : vector<1x1x1x16xf32> to vector<1x16xf32>
    %46 = vector.shape_cast %45 : vector<1x16xf32> to vector<1x1x16xf32>
    %47 = vector.extract_strided_slice %7 {offsets = [1, 0, 0], sizes = [1, 3, 1], strides = [1, 1, 1]} : vector<2x3x1xf32> to vector<1x3x1xf32>
    %48 = vector.shape_cast %47 : vector<1x3x1xf32> to vector<3x1xf32>
    %49 = vector.shape_cast %48 : vector<3x1xf32> to vector<1x3x1xf32>
    %50 = vector.extract_strided_slice %8 {offsets = [1, 0, 0], sizes = [1, 3, 1], strides = [1, 1, 1]} : vector<2x3x1xf32> to vector<1x3x1xf32>
    %51 = vector.shape_cast %50 : vector<1x3x1xf32> to vector<3x1xf32>
    %52 = vector.shape_cast %51 : vector<3x1xf32> to vector<1x3x1xf32>
    %53 = vector.broadcast %43 : vector<1x1x16xf32> to vector<1x3x16xf32>
    %54 = vector.broadcast %49 : vector<1x3x1xf32> to vector<1x3x16xf32>
    %55 = arith.mulf %53, %54 : vector<1x3x16xf32>
    %56 = arith.addf %30, %55 : vector<1x3x16xf32>
    %57 = vector.broadcast %46 : vector<1x1x16xf32> to vector<1x3x16xf32>
    %58 = vector.broadcast %49 : vector<1x3x1xf32> to vector<1x3x16xf32>
    %59 = arith.mulf %57, %58 : vector<1x3x16xf32>
    %60 = arith.addf %34, %59 : vector<1x3x16xf32>
    %61 = vector.broadcast %43 : vector<1x1x16xf32> to vector<1x3x16xf32>
    %62 = vector.broadcast %52 : vector<1x3x1xf32> to vector<1x3x16xf32>
    %63 = arith.mulf %61, %62 : vector<1x3x16xf32>
    %64 = vector.broadcast %46 : vector<1x1x16xf32> to vector<1x3x16xf32>
    %65 = vector.broadcast %52 : vector<1x3x1xf32> to vector<1x3x16xf32>
    %66 = arith.mulf %64, %65 : vector<1x3x16xf32>
    %cst_16 = arith.constant 6.28318548 : f32
    %67 = vector.broadcast %cst_16 : f32 to vector<1x3x16xf32>
    %68 = arith.mulf %67, %56 : vector<1x3x16xf32>
    %69 = math.cos %68 : vector<1x3x16xf32>
    %cst_17 = arith.constant 6.28318548 : f32
    %70 = vector.broadcast %cst_17 : f32 to vector<1x3x16xf32>
    %71 = arith.mulf %70, %56 : vector<1x3x16xf32>
    %72 = math.sin %71 : vector<1x3x16xf32>
    %cst_18 = arith.constant 6.28318548 : f32
    %73 = vector.broadcast %cst_18 : f32 to vector<1x3x16xf32>
    %74 = arith.mulf %73, %60 : vector<1x3x16xf32>
    %75 = math.cos %74 : vector<1x3x16xf32>
    %cst_19 = arith.constant 6.28318548 : f32
    %76 = vector.broadcast %cst_19 : f32 to vector<1x3x16xf32>
    %77 = arith.mulf %76, %60 : vector<1x3x16xf32>
    %78 = math.sin %77 : vector<1x3x16xf32>
    %79 = vector.shape_cast %10 : vector<1x16xf32> to vector<1x1x16xf32>
    %80 = vector.broadcast %79 : vector<1x1x16xf32> to vector<1x3x16xf32>
    %81 = arith.mulf %69, %80 : vector<1x3x16xf32>
    %82 = vector.shape_cast %10 : vector<1x16xf32> to vector<1x1x16xf32>
    %83 = vector.broadcast %82 : vector<1x1x16xf32> to vector<1x3x16xf32>
    %84 = arith.mulf %72, %83 : vector<1x3x16xf32>
    %85 = vector.shape_cast %81 : vector<1x3x16xf32> to vector<1x3x16x1xf32>
    %86 = vector.shape_cast %84 : vector<1x3x16xf32> to vector<1x3x16x1xf32>
    %87 = tpu.concatenate %85, %86 in 3 : vector<1x3x16x1xf32>, vector<1x3x16x1xf32> -> vector<1x3x16x2xf32>
    %88 = vector.shape_cast %40 : vector<1x3x16xf32> to vector<1x3x16x1xf32>
    %89 = vector.shape_cast %37 : vector<1x3x16xf32> to vector<1x3x1x16xf32>
    %90 = vector.broadcast %88 : vector<1x3x16x1xf32> to vector<1x3x16x16xf32>
    %91 = vector.broadcast %89 : vector<1x3x1x16xf32> to vector<1x3x16x16xf32>
    %92 = arith.subf %90, %91 : vector<1x3x16x16xf32>
    %93 = arith.mulf %92, %92 : vector<1x3x16x16xf32>
    %94 = vector.shape_cast %66 : vector<1x3x16xf32> to vector<1x3x16x1xf32>
    %95 = vector.shape_cast %63 : vector<1x3x16xf32> to vector<1x3x1x16xf32>
    %96 = vector.broadcast %94 : vector<1x3x16x1xf32> to vector<1x3x16x16xf32>
    %97 = vector.broadcast %95 : vector<1x3x1x16xf32> to vector<1x3x16x16xf32>
    %98 = arith.subf %96, %97 : vector<1x3x16x16xf32>
    %99 = arith.mulf %98, %98 : vector<1x3x16x16xf32>
    %100 = arith.addf %93, %99 : vector<1x3x16x16xf32>
    %cst_20 = arith.constant 0.000000e+00 : f32
    %101 = vector.broadcast %cst_20 : f32 to vector<1x3x16x16xf32>
    %102 = arith.subf %101, %100 : vector<1x3x16x16xf32>
    %103 = math.exp %102 : vector<1x3x16x16xf32>
    %104 = vector.shape_cast %103 : vector<1x3x16x16xf32> to vector<3x16x16xf32>
    %105 = vector.shape_cast %87 : vector<1x3x16x2xf32> to vector<3x16x2xf32>
    "tpu.trace_start"() <{level = 10 : i32, message = "zac,zcj->zaj"}> : () -> ()
    %cst_21 = arith.constant dense<0.000000e+00> : vector<3x16x2xf32>
    %106 = tpu.matmul %104, %105, %cst_21 {dimension_numbers = #tpu.dot_dimension_numbers<[2], [1], [1], [2], [0, 0, 0, 1, 1, 2], [0], [0]>} : vector<3x16x16xf32>, vector<3x16x2xf32>, vector<3x16x2xf32> -> vector<3x16x2xf32>
    "tpu.trace_stop"() : () -> ()
    %107 = vector.shape_cast %106 : vector<3x16x2xf32> to vector<1x3x16x2xf32>
    %108 = vector.extract_strided_slice %107 {offsets = [0, 0, 0, 0], sizes = [1, 3, 16, 1], strides = [1, 1, 1, 1]} : vector<1x3x16x2xf32> to vector<1x3x16x1xf32>
    %109 = vector.shape_cast %108 : vector<1x3x16x1xf32> to vector<1x3x16xf32>
    %110 = arith.mulf %75, %109 : vector<1x3x16xf32>
    %111 = vector.extract_strided_slice %107 {offsets = [0, 0, 0, 1], sizes = [1, 3, 16, 1], strides = [1, 1, 1, 1]} : vector<1x3x16x2xf32> to vector<1x3x16x1xf32>
    %112 = vector.shape_cast %111 : vector<1x3x16x1xf32> to vector<1x3x16xf32>
    %113 = arith.mulf %78, %112 : vector<1x3x16xf32>
    %114 = arith.addf %110, %113 : vector<1x3x16xf32>
    %115 = tpu.transpose %114, [0, 2, 1] : vector<1x3x16xf32> -> vector<1x16x3xf32>
    %116 = vector.shape_cast %115 : vector<1x16x3xf32> to vector<16x3xf32>
    %c0_22 = arith.constant 0 : index
    %c0_23 = arith.constant 0 : index
    %117 = vector.load %arg7[%c0_22, %c0_23] : memref<3x16xf32, #tpu.memory_space<vmem>>, vector<3x16xf32>
    %cst_24 = arith.constant dense<0.000000e+00> : vector<16x16xf32>
    %118 = tpu.matmul %116, %117, %cst_24 {dimension_numbers = #tpu.dot_dimension_numbers<[1], [0], [0], [1], [0, 0, 1, 1], [], []>} : vector<16x3xf32>, vector<3x16xf32>, vector<16x16xf32> -> vector<16x16xf32>
    %119 = vector.shape_cast %118 : vector<16x16xf32> to vector<1x16x16xf32>
    %120 = vector.shape_cast %12 : vector<1x16xf32> to vector<1x16x1xf32>
    %c0_25 = arith.constant 0 : index
    %c0_26 = arith.constant 0 : index
    %121 = vector.load %arg8[%c0_25, %c0_26] : memref<1x16xf32, #tpu.memory_space<vmem>>, vector<1x16xf32>
    %122 = vector.shape_cast %121 : vector<1x16xf32> to vector<1x1x16xf32>
    %123 = vector.broadcast %120 : vector<1x16x1xf32> to vector<1x16x16xf32>
    %124 = vector.broadcast %122 : vector<1x1x16xf32> to vector<1x16x16xf32>
    %125 = arith.mulf %123, %124 : vector<1x16x16xf32>
    %126 = arith.addf %119, %125 : vector<1x16x16xf32>
    %c0_27 = arith.constant 0 : index
    %c0_28 = arith.constant 0 : index
    %127 = vector.load %arg9[%c0_27, %c0_28] : memref<1x16xf32, #tpu.memory_space<vmem>>, vector<1x16xf32>
    %128 = vector.shape_cast %127 : vector<1x16xf32> to vector<1x1x16xf32>
    %129 = vector.broadcast %128 : vector<1x1x16xf32> to vector<1x16x16xf32>
    %130 = arith.addf %126, %129 : vector<1x16x16xf32>
    %cst_29 = arith.constant 0.000000e+00 : f32
    %131 = vector.broadcast %cst_29 : f32 to vector<1x16x16xf32>
    %132 = arith.maximumf %130, %131 : vector<1x16x16xf32>
    %cst_30 = arith.constant dense<0.000000e+00> : vector<1x16xf32>
    %133 = vector.multi_reduction <add>, %132, %cst_30 [1] : vector<1x16x16xf32> to vector<1x16xf32>
    %134 = arith.index_cast %arg1 : i32 to index
    %c0_31 = arith.constant 0 : index
    %c0_32 = arith.constant 0 : index
    %135 = vector.load %arg19[%134, %c0_31, %c0_32] : memref<2x1x16xf32, #tpu.memory_space<vmem>>, vector<1x1x16xf32>
    %136 = vector.shape_cast %135 : vector<1x1x16xf32> to vector<1x16xf32>
    %137 = arith.addf %136, %133 : vector<1x16xf32>
    %138 = arith.index_cast %arg1 : i32 to index
    %c0_33 = arith.constant 0 : index
    %c0_34 = arith.constant 0 : index
    %139 = vector.load %arg19[%138, %c0_33, %c0_34] : memref<2x1x16xf32, #tpu.memory_space<vmem>>, vector<1x1x16xf32>
    %140 = vector.shape_cast %139 : vector<1x1x16xf32> to vector<1x16xf32>
    %141 = vector.shape_cast %137 : vector<1x16xf32> to vector<1x1x16xf32>
    tpu.vector_store %arg19[%138, %c0_33, %c0_34], %141 {strides = array<i32>} : memref<2x1x16xf32, #tpu.memory_space<vmem>>, vector<1x1x16xf32>,
    %c1_i32 = arith.constant 1 : i32
    %142 = arith.cmpi eq, %arg1, %c1_i32 : i32
    %c0_i32_35 = arith.constant 0 : i32
    %143 = arith.cmpi eq, %arg2, %c0_i32_35 : i32
    %144 = arith.andi %142, %143 : i1
    %145 = arith.extui %144 : i1 to i32
    %c0_i32_36 = arith.constant 0 : i32
    %146 = arith.cmpi ne, %145, %c0_i32_36 : i32
    scf.if %146 {
      %cst_37 = arith.constant 0.000000e+00 : f32
      %147 = vector.broadcast %cst_37 : f32 to vector<1x16xf32>
      %c0_38 = arith.constant 0 : index
      %c0_39 = arith.constant 0 : index
      %c0_40 = arith.constant 0 : index
      %148 = vector.load %arg19[%c0_38, %c0_39, %c0_40] : memref<2x1x16xf32, #tpu.memory_space<vmem>>, vector<1x1x16xf32>
      %149 = vector.shape_cast %148 : vector<1x1x16xf32> to vector<1x16xf32>
      %cst_41 = arith.constant 6.250000e-02 : f32
      %150 = vector.broadcast %cst_41 : f32 to vector<1x16xf32>
      %151 = arith.mulf %149, %150 : vector<1x16xf32>
      %c0_42 = arith.constant 0 : index
      %c0_43 = arith.constant 0 : index
      %152 = vector.load %arg10[%c0_42, %c0_43] : memref<32x16xf32, #tpu.memory_space<vmem>>, vector<16x16xf32>
      %cst_44 = arith.constant dense<0.000000e+00> : vector<1x16xf32>
      %153 = tpu.matmul %151, %152, %cst_44 {dimension_numbers = #tpu.dot_dimension_numbers<[1], [0], [0], [1], [0, 0, 1, 1], [], []>} : vector<1x16xf32>, vector<16x16xf32>, vector<1x16xf32> -> vector<1x16xf32>
      %154 = arith.addf %147, %153 : vector<1x16xf32>
      %c1 = arith.constant 1 : index
      %c0_45 = arith.constant 0 : index
      %c0_46 = arith.constant 0 : index
      %155 = vector.load %arg19[%c1, %c0_45, %c0_46] : memref<2x1x16xf32, #tpu.memory_space<vmem>>, vector<1x1x16xf32>
      %156 = vector.shape_cast %155 : vector<1x1x16xf32> to vector<1x16xf32>
      %cst_47 = arith.constant 6.250000e-02 : f32
      %157 = vector.broadcast %cst_47 : f32 to vector<1x16xf32>
      %158 = arith.mulf %156, %157 : vector<1x16xf32>
      %c16 = arith.constant 16 : index
      %c0_48 = arith.constant 0 : index
      %159 = vector.load %arg10[%c16, %c0_48] : memref<32x16xf32, #tpu.memory_space<vmem>>, vector<16x16xf32>
      %cst_49 = arith.constant dense<0.000000e+00> : vector<1x16xf32>
      %160 = tpu.matmul %158, %159, %cst_49 {dimension_numbers = #tpu.dot_dimension_numbers<[1], [0], [0], [1], [0, 0, 1, 1], [], []>} : vector<1x16xf32>, vector<16x16xf32>, vector<1x16xf32> -> vector<1x16xf32>
      %161 = arith.addf %154, %160 : vector<1x16xf32>
      %c0_50 = arith.constant 0 : index
      %c0_51 = arith.constant 0 : index
      %162 = vector.load %arg11[%c0_50, %c0_51] : memref<1x16xf32, #tpu.memory_space<vmem>>, vector<1x16xf32>
      %163 = arith.addf %161, %162 : vector<1x16xf32>
      %cst_52 = arith.constant 0.000000e+00 : f32
      %164 = vector.broadcast %cst_52 : f32 to vector<1x16xf32>
      %165 = arith.maximumf %163, %164 : vector<1x16xf32>
      %c0_53 = arith.constant 0 : index
      %c0_54 = arith.constant 0 : index
      %166 = vector.load %arg12[%c0_53, %c0_54] : memref<16x16xf32, #tpu.memory_space<vmem>>, vector<16x16xf32>
      %cst_55 = arith.constant dense<0.000000e+00> : vector<1x16xf32>
      %167 = tpu.matmul %165, %166, %cst_55 {dimension_numbers = #tpu.dot_dimension_numbers<[1], [0], [0], [1], [0, 0, 1, 1], [], []>} : vector<1x16xf32>, vector<16x16xf32>, vector<1x16xf32> -> vector<1x16xf32>
      %c0_56 = arith.constant 0 : index
      %c0_57 = arith.constant 0 : index
      %168 = vector.load %arg13[%c0_56, %c0_57] : memref<1x16xf32, #tpu.memory_space<vmem>>, vector<1x16xf32>
      %169 = arith.addf %167, %168 : vector<1x16xf32>
      %cst_58 = arith.constant 0.000000e+00 : f32
      %170 = vector.broadcast %cst_58 : f32 to vector<1x16xf32>
      %171 = arith.maximumf %169, %170 : vector<1x16xf32>
      %c0_59 = arith.constant 0 : index
      %c0_60 = arith.constant 0 : index
      %172 = vector.load %arg14[%c0_59, %c0_60] : memref<16x16xf32, #tpu.memory_space<vmem>>, vector<16x16xf32>
      %cst_61 = arith.constant dense<0.000000e+00> : vector<1x16xf32>
      %173 = tpu.matmul %171, %172, %cst_61 {dimension_numbers = #tpu.dot_dimension_numbers<[1], [0], [0], [1], [0, 0, 1, 1], [], []>} : vector<1x16xf32>, vector<16x16xf32>, vector<1x16xf32> -> vector<1x16xf32>
      %c0_62 = arith.constant 0 : index
      %c0_63 = arith.constant 0 : index
      %174 = vector.load %arg15[%c0_62, %c0_63] : memref<1x16xf32, #tpu.memory_space<vmem>>, vector<1x16xf32>
      %175 = arith.addf %173, %174 : vector<1x16xf32>
      %cst_64 = arith.constant 0.000000e+00 : f32
      %176 = vector.broadcast %cst_64 : f32 to vector<1x16xf32>
      %177 = arith.maximumf %175, %176 : vector<1x16xf32>
      %c0_65 = arith.constant 0 : index
      %c0_66 = arith.constant 0 : index
      %178 = vector.load %arg16[%c0_65, %c0_66] : memref<16x6xf32, #tpu.memory_space<vmem>>, vector<16x6xf32>
      %cst_67 = arith.constant dense<0.000000e+00> : vector<1x6xf32>
      %179 = tpu.matmul %177, %178, %cst_67 {dimension_numbers = #tpu.dot_dimension_numbers<[1], [0], [0], [1], [0, 0, 1, 1], [], []>} : vector<1x16xf32>, vector<16x6xf32>, vector<1x6xf32> -> vector<1x6xf32>
      %c0_68 = arith.constant 0 : index
      %c0_69 = arith.constant 0 : index
      %180 = vector.load %arg17[%c0_68, %c0_69] : memref<1x6xf32, #tpu.memory_space<vmem>>, vector<1x6xf32>
      %181 = arith.addf %179, %180 : vector<1x6xf32>
      %c0_70 = arith.constant 0 : index
      %c0_71 = arith.constant 0 : index
      %c0_72 = arith.constant 0 : index
      %182 = vector.load %arg18[%c0_70, %c0_71, %c0_72] : memref<1x1x6xf32, #tpu.memory_space<vmem>>, vector<1x1x6xf32>
      %183 = vector.shape_cast %182 : vector<1x1x6xf32> to vector<1x6xf32>
      %184 = vector.shape_cast %181 : vector<1x6xf32> to vector<1x1x6xf32>
      tpu.vector_store %arg18[%c0_70, %c0_71, %c0_72], %184 {strides = array<i32>} : memref<1x1x6xf32, #tpu.memory_space<vmem>>, vector<1x1x6xf32>,
    } else {
    }
    return
  }
  func.func @transform_0(%arg0: i32, %arg1: i32, %arg2: i32) -> (i32, i32, i32, i32) {
    %c0_i32 = arith.constant 0 : i32
    %c0_i32_0 = arith.constant 0 : i32
    %c0_i32_1 = arith.constant 0 : i32
    return %arg0, %arg1, %c0_i32, %c0_i32_0 : i32, i32, i32, i32
  }
  func.func @transform_1(%arg0: i32, %arg1: i32, %arg2: i32) -> (i32, i32, i32, i32) {
    %c0_i32 = arith.constant 0 : i32
    %c0_i32_0 = arith.constant 0 : i32
    return %arg0, %arg1, %c0_i32, %arg2 : i32, i32, i32, i32
  }
  func.func @transform_2(%arg0: i32, %arg1: i32, %arg2: i32) -> (i32, i32, i32) {
    %c0_i32 = arith.constant 0 : i32
    %c0_i32_0 = arith.constant 0 : i32
    %c0_i32_1 = arith.constant 0 : i32
    %c0_i32_2 = arith.constant 0 : i32
    return %c0_i32, %c0_i32_0, %c0_i32_1 : i32, i32, i32
  }
  func.func @transform_3(%arg0: i32, %arg1: i32, %arg2: i32) -> (i32, i32, i32) {
    %c0_i32 = arith.constant 0 : i32
    %c0_i32_0 = arith.constant 0 : i32
    %c0_i32_1 = arith.constant 0 : i32
    %c0_i32_2 = arith.constant 0 : i32
    return %c0_i32, %c0_i32_0, %c0_i32_1 : i32, i32, i32
  }
  func.func @transform_4(%arg0: i32, %arg1: i32, %arg2: i32) -> (i32, i32) {
    %c0_i32 = arith.constant 0 : i32
    %c0_i32_0 = arith.constant 0 : i32
    %c0_i32_1 = arith.constant 0 : i32
    return %c0_i32, %c0_i32_0 : i32, i32
  }
  func.func @transform_5(%arg0: i32, %arg1: i32, %arg2: i32) -> (i32, i32) {
    %c0_i32 = arith.constant 0 : i32
    %c0_i32_0 = arith.constant 0 : i32
    %c0_i32_1 = arith.constant 0 : i32
    return %c0_i32, %c0_i32_0 : i32, i32
  }
  func.func @transform_6(%arg0: i32, %arg1: i32, %arg2: i32) -> (i32, i32) {
    %c0_i32 = arith.constant 0 : i32
    %c0_i32_0 = arith.constant 0 : i32
    %c0_i32_1 = arith.constant 0 : i32
    return %c0_i32, %c0_i32_0 : i32, i32
  }
  func.func @transform_7(%arg0: i32, %arg1: i32, %arg2: i32) -> (i32, i32) {
    %c0_i32 = arith.constant 0 : i32
    %c0_i32_0 = arith.constant 0 : i32
    %c0_i32_1 = arith.constant 0 : i32
    return %c0_i32, %c0_i32_0 : i32, i32
  }
  func.func @transform_8(%arg0: i32, %arg1: i32, %arg2: i32) -> (i32, i32) {
    %c0_i32 = arith.constant 0 : i32
    %c0_i32_0 = arith.constant 0 : i32
    %c0_i32_1 = arith.constant 0 : i32
    return %c0_i32, %c0_i32_0 : i32, i32
  }
  func.func @transform_9(%arg0: i32, %arg1: i32, %arg2: i32) -> (i32, i32) {
    %c0_i32 = arith.constant 0 : i32
    %c0_i32_0 = arith.constant 0 : i32
    %c0_i32_1 = arith.constant 0 : i32
    return %c0_i32, %c0_i32_0 : i32, i32
  }
  func.func @transform_10(%arg0: i32, %arg1: i32, %arg2: i32) -> (i32, i32) {
    %c0_i32 = arith.constant 0 : i32
    %c0_i32_0 = arith.constant 0 : i32
    %c0_i32_1 = arith.constant 0 : i32
    return %c0_i32, %c0_i32_0 : i32, i32
  }
  func.func @transform_11(%arg0: i32, %arg1: i32, %arg2: i32) -> (i32, i32) {
    %c0_i32 = arith.constant 0 : i32
    %c0_i32_0 = arith.constant 0 : i32
    %c0_i32_1 = arith.constant 0 : i32
    return %c0_i32, %c0_i32_0 : i32, i32
  }
  func.func @transform_12(%arg0: i32, %arg1: i32, %arg2: i32) -> (i32, i32) {
    %c0_i32 = arith.constant 0 : i32
    %c0_i32_0 = arith.constant 0 : i32
    %c0_i32_1 = arith.constant 0 : i32
    return %c0_i32, %c0_i32_0 : i32, i32
  }
  func.func @transform_13(%arg0: i32, %arg1: i32, %arg2: i32) -> (i32, i32) {
    %c0_i32 = arith.constant 0 : i32
    %c0_i32_0 = arith.constant 0 : i32
    %c0_i32_1 = arith.constant 0 : i32
    return %c0_i32, %c0_i32_0 : i32, i32
  }
  func.func @transform_14(%arg0: i32, %arg1: i32, %arg2: i32) -> (i32, i32) {
    %c0_i32 = arith.constant 0 : i32
    %c0_i32_0 = arith.constant 0 : i32
    %c0_i32_1 = arith.constant 0 : i32
    return %c0_i32, %c0_i32_0 : i32, i32
  }
  func.func @transform_15(%arg0: i32, %arg1: i32, %arg2: i32) -> (i32, i32, i32) {
    %c0_i32 = arith.constant 0 : i32
    %c0_i32_0 = arith.constant 0 : i32
    %c0_i32_1 = arith.constant 0 : i32
    return %arg0, %c0_i32, %c0_i32_0 : i32, i32, i32
  }
}

</mosaic_0001>

<bundles_post_ra>
// kernel: tpu_custom_call.1
= control target key start
LH: loop header
LB: loop body
LE: loop exit
PB: predicated region body
PF: predicated region fallthrough
CT: control target
= control target key end

     0   :  { %s2838_s0 = inlined_call_operand.vmem [shape: f32[2,2,3,16], index: 0, kind: input, shape index: {}]   ;;  %s2839_s1 = inlined_call_operand.vmem [shape: f32[2,2,3,16], index: 1, kind: input, shape index: {}]   ;;  %s2840_s2 = inlined_call_operand.vmem [shape: f32[2,3,1], index: 2, kind: input, shape index: {}]   ;;  %s2841_s3 = inlined_call_operand.vmem [shape: f32[2,3,1], index: 3, kind: input, shape index: {}]   ;;  %s2842_s4 = inlined_call_operand.vmem [shape: f32[3,16], index: 4, kind: input, shape index: {}]   ;;  %s2843_s5 = inlined_call_operand.vmem [shape: f32[1,16], index: 5, kind: input, shape index: {}]   ;;  %s2844_s6 = inlined_call_operand.vmem [shape: f32[1,16], index: 6, kind: input, shape index: {}]   ;;  %s2845_s7 = inlined_call_operand.vmem [shape: f32[32,16], index: 7, kind: input, shape index: {}]   ;;  %s2846_s8 = inlined_call_operand.vmem [shape: f32[1,16], index: 8, kind: input, shape index: {}]   ;;  %s2847_s9 = inlined_call_operand.vmem [shape: f32[16,16], index: 9, kind: input, shape index: {}]   ;;  %s2848_s10 = inlined_call_operand.vmem [shape: f32[1,16], index: 10, kind: input, shape index: {}]   ;;  %s2849_s11 = inlined_call_operand.vmem [shape: f32[16,16], index: 11, kind: input, shape index: {}]   ;;  %s2850_s12 = inlined_call_operand.vmem [shape: f32[1,16], index: 12, kind: input, shape index: {}]   ;;  %s2851_s13 = inlined_call_operand.vmem [shape: f32[16,6], index: 13, kind: input, shape index: {}]   ;;  %s2852_s14 = inlined_call_operand.vmem [shape: f32[1,6], index: 14, kind: input, shape index: {}]   ;;  %s2853_s15 = inlined_call_operand.hbm [shape: f32[2,1,6], index: 15, kind: output, shape index: {}]  }
   0x1   :  { %2865 = sst [smem:[#allocation16_spill]] %s2838_s0 }
   0x2   :  { %2866 = sst [smem:[#allocation17_spill]] %s2839_s1 }
   0x3   :  { %2867 = sst [smem:[#allocation18_spill]] %s2853_s15 }
   0x4   :  { %20 = vsyncpa [#allocation4], 0 }
   0x5   :  { %22 = vsyncpa [#allocation4 + $0x1], 0  ;;  %s2368_s18 = smov 0   ;;  %s2370_s19 = smov 0  }
   0x6   :  { %s2372_s20 = smov 0   ;;  %s2374_s21 = smov 0  }
   0x7   :  { %s2376_s22 = smov 0   ;;  %s2378_s23 = smov 0  }
   0x8   :  { %s2380_s24 = smov 0   ;;  %s2382_s25 = smov 0  }
   0x9 LB: > { %2868 = sst [smem:[#allocation6_spill]] %s2249_s18  ;;  %s1995_s26 = sadd.s32 4294967295, %s2277_s25   ;;  %s2277_s25 = sphi %s2382_s25, %s28_s25   ;;  %s2273_s24 = sphi %s2380_s24, %s2895_s24   ;;  %s2269_s23 = sphi %s2378_s23, %s2894_s23   ;;  %s2265_s22 = sphi %s2376_s22, %s2893_s22   ;;  %s2261_s21 = sphi %s2374_s21, %s2892_s21   ;;  %s2257_s20 = sphi %s2372_s20, %s2891_s20   ;;  %s2253_s19 = sphi %s2370_s19, %s2897_s19   ;;  %s2249_s18 = sphi %s2368_s18, %s2896_s18  }
   0xa   : > { %2869 = sst [smem:[#allocation7_spill]] %s2257_s20  ;;  %s1996_s27 = sadd.s32 4294967294, %s2277_s25  }
   0xb   : > { %2870 = sst [smem:[#allocation8_spill]] %s2269_s23  ;;  %s43_s28 = sadd.s32 1, %s2269_s23 }
   0xc   : > { %2871 = sst [smem:[#allocation9_spill]] %s2273_s24  ;;  %p45_p0 = scmp.ge.s32.totalorder %s43_s28, 2 }
   0xd   : > { %2872 = sst [smem:[#allocation10_spill]] %s2277_s25  ;;  %s47_s29 = sadd.s32 1, %s2273_s24 }
   0xe   : > { %p395_p1 = scmp.ne.s32.totalorder %s2257_s20, %s2253_s19  ;;  %p396_p2 = scmp.eq.s32.totalorder %s1995_s26, 3 }
   0xf   : > { %s2899_s28 = smov (%p45_p0, %s43_s28), 0  ;;  %s2901_s29 = smov (!%p45_p0, %s47_s29), %s2273_s24 }
  0x10   : > { %2873 = sst [smem:[#allocation11_spill]] %s2899_s28  ;;  %p2417_p3 = por %p396_p2, %p395_p1 }
  0x11   : > { %p401_p4 = scmp.ne.s32.totalorder %s2253_s19, %s2249_s18  ;;  %p49_p5 = scmp.ge.s32.totalorder %s2901_s29, 2 }
  0x12   : > { %s2874_s30 = scalar_select %p2417_p3, 1, 0 }
  0x13   : > { %p402_p6 = scmp.eq.s32.totalorder %s1996_s27, 3  ;;  %p1999_p7 = scmp.ge.s32.totalorder %s2277_s25, 1 }
  0x14   : > { %2875 = sst [smem:[#allocation12_spill]] %s2874_s30  ;;  %p484_p8 = scmp.lt.s32.totalorder %s2277_s25, 5 }
  0x15   : > { %s2903_s29 = smov (%p49_p5, %s2901_s29), 0  ;;  %p2427_p9 = por %p402_p6, %p401_p4 }
  0x16   : > { %2876 = sst [smem:[#allocation13_spill]] %s2903_s29  ;;  %p485_p10 = pnand %p1999_p7, %p484_p8 }
  0x17   : > { %s2877_s16 = scalar_select %p2427_p9, 1, 0 }
  0x18   : > { %s382_s17 = ssub.s32 %s2273_s24, %s2903_s29  ;;  %s385_s26 = sadd.s32 1, %s2257_s20 }
  0x19   : > { %2878 = sst [smem:[#allocation14_spill]] %s2877_s16  ;;  %p383_p11 = scmp.eq.s32.totalorder %s382_s17, 0 }
  0x1a   : > { %488 = sbr.rel (%p485_p10) target bundleno = 1581 (0x62d), region = 80  ;;  %s543_s27 = sand.u32 (!%p485_p10), 1, %s2253_s19  }
  0x1b   : > { %s2435_s28 = scalar_select %p383_p11, %s2257_s20, %s385_s26  }
  0x1c   : > { %p545_p12 = scmp.lt.s32.totalorder (!%p485_p10), %s2265_s22, 1  ;;  %p547_p13 = scmp.lt.s32.totalorder (!%p485_p10), %s2261_s21, 1 }
  0x1d   : > { %2879 = sst [smem:[#allocation15_spill]] %s2435_s28  ;;  %p564_p0 = scmp.eq.s32.totalorder (!%p485_p10), %s2261_s21, 0 }
  0x1e   : > { %s2880_s0 = sld [smem:[#allocation16_spill]] (!%p485_p10)  ;;  %s2453_s15 = scalar_lea.vmem (!%p485_p10), [#allocation3], %s543_s27 }
  0x1f   : > { %s546_s23 = scalar_select %p545_p12, %s2265_s22, 1  ;;  %vm570_vm0 = vcmask (%p564_p0), 122880   ;;  %v2279_v0 = vmov (%p564_p0), 0.0  }
  0x20   : > { %s548_s18 = scalar_select %p547_p13, %s2261_s21, 1  ;;  %571 = vst.msk [vmem:[#allocation2] sm:$0x1] (%p564_p0), %vm570_vm0, %v2279_v0 }
  0x21   : > { %s2000_s16 = sshll.u32 %s546_s23, 1  ;;  %s2881_s1 = sld [smem:[#allocation17_spill]]  ;;  %572 = vst.msk [vmem:[#allocation2 + $0x1] sm:$0x1] (%p564_p0), %vm570_vm0, %v2279_v0 }
  0x22   : > { %s550_s29 = sadd.s32 %s2000_s16, %s548_s18 }
  0x23   : > { %s2001_s24 = sshll.u32 %s550_s29, 2  ;;  %569 = sbr.rel (!%p564_p0) target bundleno = 40 (0x28), region = 84 }
  0x24   : > { %s552_s28 = scalar_lea.vmem %s2880_s0, %s2001_s24 }
  0x27   : > { %s2449_s30 = scalar_lea.vmem %s2881_s1, %s2001_s24 }
  0x28 PF: > { %v577_v1 = vld [vmem:[%s2841_s3] sm:$0x7]  ;;  %v1239_v3 = vlaneseq  ;;  %v2280_v4 = vmov 0   ;;  %v578_v6 = vld [vmem:[%s2841_s3 + $0x4] sm:$0x7]  ;;  %p1740_p1 = scmp.eq.s32.totalorder %s2261_s21, 1 }
  0x29   : > { %v575_v2 = vld [vmem:[%s2840_s2] sm:$0x7]  ;;  %2118 = vset.pattern.permute.xlu1 %v2280_v4  ;;  %2117 = vset.pattern.permute.xlu0 %v2280_v4  ;;  %v576_v7 = vld [vmem:[%s2840_s2 + $0x4] sm:$0x7]  ;;  %v2281_v60 = vmov 683565275  }
  0x2a   : > { %592 = vperm.xlu1 %2118, %v577_v1   ;;  %582 = vperm.xlu0 %2117, %v575_v2   ;;  %v2464_v5 = vshrl.u32 %v1239_v3, 7  ;;  %v574_v8 = vld [vmem:[%s2449_s30] sm:$0x7]  ;;  %v2282_v62 = vmov 2475754826   ;;  %s1735_s16 = scalar_lea.vmem [#allocation2], %s2261_s21 }
  0x2b   : > { %v2476_v9 = vld [vmem:[%s552_s28] sm:$0x7]  ;;  %v587_v10 = vperm.slane %v574_v8, 0  ;;  %v605_v21 = vperm.slane %v574_v8, 1  ;;  %v2283_v1 = vmov 2131351028  }
  0x2c   : > { %2119 = vset.pattern.permute.xlu2 %v2464_v5  ;;  %v579_v11 = vperm.slane %v2476_v9, 0  ;;  %v597_v20 = vperm.slane %v2476_v9, 1  ;;  %v2501_v28 = vadd.s32 8, %v2464_v5  ;;  %v2285_v8 = vmov 920167782  }
  0x32   : > { %610 = vperm.xlu1 %2118, %v578_v6   ;;  %600 = vperm.xlu0 %2117, %v576_v7   ;;  %v2284_v6 = vmov 2102212464  }
  0x3a   : > { %2121 = vset.pattern.permute.xlu1 %v2464_v5  ;;  %2120 = vset.pattern.permute.xlu0 %v2464_v5 }
  0x9c   : > { %v593_v12 = vpop.permute.xlu1 %592  ;;  %v583_v13 = vpop.permute.xlu0 %582 }
  0x9d   : > { %v2479_v14 = vmul.f32 %v593_v12, %v579_v11  ;;  %v2481_v15 = vmul.f32 %v593_v12, %v587_v10  ;;  %v588_v16 = vmul.f32 %v587_v10, %v583_v13  ;;  %v585_v24 = vmul.f32 %v583_v13, %v579_v11 }
  0x9f   : > { %v1349_v17 = vperm.slane %v2481_v15, 2  ;;  %v1336_v18 = vperm.slane %v2481_v15, 1  ;;  %v1323_v19 = vperm.slane %v2481_v15, 0 }
  0xa1   : > { %1354 = vperm.xlu2 %2119, %v1349_v17   ;;  %1341 = vperm.xlu1 %2121, %v1336_v18  }
  0xa2   : > { %1328 = vperm.xlu0 %2120, %v1323_v19  }
  0xa4   : > { %v2493_v22 = vpop.permute.xlu1 %610  ;;  %v601_v23 = vpop.permute.xlu0 %600 }
  0xa5   : > { %v2496_v25 = vmul.f32 %v2493_v22, %v605_v21  ;;  %v603_v26 = vmul.f32 %v601_v23, %v597_v20  ;;  %v606_v27 = vmul.f32 %v605_v21, %v601_v23  ;;  %v2286_v23 = vmov 1326507024  }
  0xa7   : > { %v604_v29 = vadd.f32 %v603_v26, %v585_v24  ;;  %v607_v30 = vadd.f32 %v606_v27, %v588_v16  ;;  %v1409_v31 = vperm.slane %v2496_v25, 2  ;;  %v1396_v32 = vperm.slane %v2496_v25, 1 }
  0xa8   : > { %v1383_v41 = vperm.slane %v2496_v25, 0 }
  0xa9   : > { %v2505_v33 = vmul.f32 6.2831855, %v604_v29  ;;  %v2507_v34 = vmul.f32 6.2831855, %v607_v30  ;;  %1414 = vperm.xlu2 %2119, %v1409_v31   ;;  %1401 = vperm.xlu1 %2121, %v1396_v32  }
  0xaa   : > { %2123 = vset.pattern.permute.xlu0 %v2501_v28 }
  0xab   : > { %v616_v35 = vand.u32 2147483647, %v2505_v33  ;;  %v619_v36 = vand.u32 2139095040, %v2505_v33  ;;  %v926_v37 = vand.u32 2147483647, %v2507_v34  ;;  %v929_v38 = vand.u32 2139095040, %v2507_v34 }
  0xad   : > { %v620_v39 = vshrl.u32 %v619_v36, 23  ;;  %v623_v40 = vand.u32 8388607, %v616_v35  ;;  %v930_v42 = vshrl.u32 %v929_v38, 23  ;;  %v933_v43 = vand.u32 8388607, %v926_v37 }
  0xaf   : > { %v2005_v44 = vadd.s32 4294967169, %v620_v39  ;;  %v624_v45 = vor.u32 8388608, %v623_v40  ;;  %v2011_v46 = vadd.s32 4294967169, %v930_v42  ;;  %v934_v49 = vor.u32 8388608, %v933_v43 }
  0xb1   : > { %v626_v47 = vadd.s32 1, %v2005_v44  ;;  %1388 = vperm.xlu2 %2119, %v1383_v41   ;;  %2124 = vset.pattern.permute.xlu1 %v2501_v28  ;;  %v2522_v48 = vshll.u32 %v624_v45, 8  ;;  %v936_v50 = vadd.s32 1, %v2011_v46  ;;  %v2532_v58 = vshll.u32 %v934_v49, 8 }
  0xb2   : > { %1420 = vperm.xlu0 %2123, %v1409_v31  }
  0xb3   : > { %vm627_vm1 = vcmp.gt.s32.totalorder %v626_v47, 0  ;;  %vm937_vm2 = vcmp.gt.s32.totalorder %v936_v50, 0  ;;  %v2525_v55 = vand.u32 65535, %v2522_v48  ;;  %v2528_v56 = vshrl.u32 %v2522_v48, 16 }
  0xb4   : > { %v628_v51 = vsel %vm627_vm1, %v626_v47, 0  ;;  %v938_v54 = vsel %vm937_vm2, %v936_v50, 0 }
  0xb5   : > { %v629_v52 = vshrl.u32 %v628_v51, 5  ;;  %v630_v53 = vand.u32 31, %v628_v51  ;;  %v2530_v57 = vshrl.u32 %v938_v54, 5  ;;  %v2534_v0 = vand.u32 31, %v938_v54 }
  0xb7   : > { %v631_v59 = vsub.s32 32, %v630_v53  ;;  %v633_v61 = vshll.u32 %v2281_v60, %v630_v53  ;;  %v636_v63 = vshll.u32 %v2282_v62, %v630_v53  ;;  %v639_v2 = vshll.u32 %v2283_v1, %v630_v53 }
  0xb8   : > { %v642_v7 = vshll.u32 %v2284_v6, %v630_v53  ;;  %v645_v10 = vshll.u32 %v2285_v8, %v630_v53  ;;  %vm648_vm3 = vcmp.lt.s32.totalorder %v629_v52, 1  ;;  %vm649_vm4 = vcmp.lt.s32.totalorder %v629_v52, 2 }
  0xb9   : > { %v634_v11 = vshrl.u32 %v2282_v62, %v631_v59  ;;  %v637_v12 = vshrl.u32 %v2283_v1, %v631_v59  ;;  %v640_v13 = vshrl.u32 %v2284_v6, %v631_v59  ;;  %2122 = vset.pattern.permute.xlu2 %v2501_v28  ;;  %v632_v16 = vshrl.u32 %v2281_v60, %v631_v59 }
  0xba   : > { %v643_v21 = vshrl.u32 %v2285_v8, %v631_v59  ;;  %v646_v24 = vshrl.u32 %v2286_v23, %v631_v59  ;;  %vm650_vm5 = vcmp.lt.s32.totalorder %v629_v52, 3  ;;  %1347 = vperm.xlu1 %2124, %v1336_v18   ;;  %1407 = vperm.xlu0 %2123, %v1396_v32   ;;  %v2545_v30 = vsub.s32 32, %v2534_v0 }
  0xbb   : > { %v635_v26 = vor.u32 %v634_v11, %v633_v61  ;;  %v638_v27 = vor.u32 %v637_v12, %v636_v63  ;;  %v641_v29 = vor.u32 %v640_v13, %v639_v2  ;;  %vm651_vm6 = vcmp.lt.s32.totalorder %v629_v52, 4 }
  0xbc   : > { %v644_v31 = vor.u32 %v643_v21, %v642_v7  ;;  %v647_v36 = vor.u32 %v646_v24, %v645_v10  ;;  %v943_v38 = vshll.u32 %v2281_v60, %v2534_v0  ;;  %v946_v45 = vshll.u32 %v2282_v62, %v2534_v0 }
  0xbd   : > { %v652_v39 = vsel %vm648_vm3, %v632_v16, %v635_v26  ;;  %v653_v40 = vsel %vm651_vm6, %v641_v29, 2102212464  ;;  %v656_v42 = vsel %vm648_vm3, %v635_v26, %v638_v27  ;;  %v660_v43 = vsel %vm648_vm3, %v638_v27, %v641_v29 }
  0xbe   : > { %v654_v18 = vsel %vm650_vm5, %v638_v27, %v653_v40  ;;  %v657_v32 = vsel %vm651_vm6, %v644_v31, 920167782  ;;  %v661_v44 = vsel %vm651_vm6, %v647_v36, 1326507024  ;;  %v942_v49 = vshrl.u32 %v2281_v60, %v2545_v30 }
  0xbf   : > { %v658_v46 = vsel %vm650_vm5, %v641_v29, %v657_v32  ;;  %v662_v47 = vsel %vm650_vm5, %v644_v31, %v661_v44  ;;  %v944_v50 = vshrl.u32 %v2282_v62, %v2545_v30  ;;  %v2558_v51 = vsel %vm649_vm4, %v652_v39, %v654_v18 }
  0xc0   : > { %v659_v53 = vsel %vm649_vm4, %v656_v42, %v658_v46  ;;  %v663_v54 = vsel %vm649_vm4, %v660_v43, %v662_v47  ;;  %v947_v59 = vshrl.u32 %v2283_v1, %v2545_v30  ;;  %v949_v62 = vshll.u32 %v2283_v1, %v2534_v0 }
  0xc1   : > { %v667_v61 = vand.u32 65535, %v663_v54  ;;  %v668_v63 = vshrl.u32 %v663_v54, 16  ;;  %v689_v2 = vand.u32 65535, %v659_v53  ;;  %v690_v7 = vshrl.u32 %v659_v53, 16  ;;  %1360 = vperm.xlu2 %2122, %v1349_v17  }
  0xc2   : > { %v945_v10 = vor.u32 %v944_v50, %v943_v38  ;;  %v948_v60 = vor.u32 %v947_v59, %v946_v45  ;;  %v950_v11 = vshrl.u32 %v2284_v6, %v2545_v30  ;;  %v952_v18 = vshll.u32 %v2284_v6, %v2534_v0 }
  0xc3   : > { %v669_v12 = vmul.u32 %v667_v61, %v2525_v55  ;;  %v670_v52 = vmul.u32 %v668_v63, %v2525_v55  ;;  %v671_v13 = vmul.u32 %v667_v61, %v2528_v56  ;;  %v672_v16 = vmul.u32 %v668_v63, %v2528_v56 }
  0xc4   : > { %v691_v21 = vmul.u32 %v689_v2, %v2525_v55  ;;  %v692_v24 = vmul.u32 %v690_v7, %v2525_v55  ;;  %v693_v17 = vmul.u32 %v689_v2, %v2528_v56  ;;  %v694_v26 = vmul.u32 %v690_v7, %v2528_v56 }
  0xc5   : > { %v673_v1 = vshll.u32 %v670_v52, 16  ;;  %v674_v27 = vshrl.u32 %v670_v52, 16  ;;  %v675_v29 = vshll.u32 %v671_v13, 16  ;;  %v676_v31 = vshrl.u32 %v671_v13, 16 }
  0xc6   : > { %v695_v36 = vshll.u32 %v692_v24, 16  ;;  %v696_v38 = vshrl.u32 %v692_v24, 16  ;;  %v697_v39 = vshll.u32 %v693_v17, 16  ;;  %v698_v40 = vshrl.u32 %v693_v17, 16 }
  0xc7   : > { %vm677_vm7 = vc.u32 %v669_v12, %v673_v1  ;;  %v679_v42 = vadd.s32 %v673_v1, %v669_v12  ;;  %v951_v43 = vor.u32 %v950_v11, %v949_v62  ;;  %v953_v56 = vshrl.u32 %v2285_v8, %v2545_v30 }
  0xc8   : > { %v678_v55 = vsel %vm677_vm7, 1, %v2280_v4  ;;  %vm699_vm8 = vc.u32 %v691_v21, %v695_v36  ;;  %v701_v32 = vadd.s32 %v695_v36, %v691_v21  ;;  %v955_v46 = vshll.u32 %v2285_v8, %v2534_v0 }
  0xc9   : > { %v680_v44 = vadd.s32 %v678_v55, %v672_v16  ;;  %vm681_vm9 = vc.u32 %v679_v42, %v675_v29  ;;  %v700_v45 = vsel %vm699_vm8, 1, %v2280_v4  ;;  %1334 = vperm.xlu2 %2122, %v1323_v19   ;;  %v954_v59 = vor.u32 %v953_v56, %v952_v18 }
  0xca   : > { %v682_v47 = vsel %vm681_vm9, 1, %v2280_v4  ;;  %v702_v6 = vadd.s32 %v700_v45, %v694_v26  ;;  %vm703_vm10 = vc.u32 %v701_v32, %v697_v39  ;;  %v2587_v50 = vadd.s32 %v701_v32, %v697_v39 }
  0xcb   : > { %v684_v53 = vadd.s32 %v682_v47, %v680_v44  ;;  %v704_v54 = vsel %vm703_vm10, 1, %v2280_v4  ;;  %v956_v61 = vshrl.u32 %v2286_v23, %v2545_v30  ;;  %vm958_vm11 = vcmp.lt.s32.totalorder %v2530_v57, 1 }
  0xcc   : > { %v706_v63 = vadd.s32 %v704_v54, %v702_v6  ;;  %vm959_vm12 = vcmp.lt.s32.totalorder %v2530_v57, 2  ;;  %vm960_vm13 = vcmp.lt.s32.totalorder %v2530_v57, 3  ;;  %vm961_vm14 = vcmp.lt.s32.totalorder %v2530_v57, 4 }
  0xcd   : > { %v685_v15 = vadd.s32 %v684_v53, %v674_v27  ;;  %v957_v19 = vor.u32 %v956_v61, %v955_v46  ;;  %v962_v0 = vsel %vm958_vm11, %v942_v49, %v945_v10  ;;  %v963_v2 = vsel %vm961_vm14, %v951_v43, 2102212464 }
  0xce   : > { %v707_v8 = vadd.s32 %v706_v63, %v696_v38  ;;  %v966_v7 = vsel %vm958_vm11, %v945_v10, %v948_v60  ;;  %v967_v62 = vsel %vm961_vm14, %v954_v59, 920167782  ;;  %v964_v23 = vsel %vm960_vm13, %v948_v60, %v963_v2 }
  0xcf   : > { %v2596_v11 = vadd.s32 %v685_v15, %v676_v31  ;;  %v968_v30 = vsel %vm960_vm13, %v951_v43, %v967_v62  ;;  %v970_v12 = vsel %vm958_vm11, %v948_v60, %v951_v43  ;;  %v2604_v13 = vsel %vm959_vm12, %v962_v0, %v964_v23 }
  0xd0   : > { %v708_v52 = vadd.s32 %v707_v8, %v698_v40  ;;  %v969_v49 = vsel %vm959_vm12, %v966_v7, %v968_v30  ;;  %v971_v16 = vsel %vm961_vm14, %v957_v19, 1326507024  ;;  %v975_v21 = vand.u32 65535, %v2532_v58 }
  0xd1   : > { %vm711_vm15 = vc.u32 %v2596_v11, %v2587_v50  ;;  %v972_v10 = vsel %vm960_vm13, %v954_v59, %v971_v16  ;;  %v999_v24 = vand.u32 65535, %v969_v49  ;;  %1394 = vperm.xlu2 %2122, %v1383_v41   ;;  %v976_v26 = vshrl.u32 %v2532_v58, 16 }
  0xd2   : > { %v712_v60 = vadd.s32 1, %v708_v52  ;;  %v973_v17 = vsel %vm959_vm12, %v970_v12, %v972_v10  ;;  %v1000_v1 = vshrl.u32 %v969_v49, 16  ;;  %v709_v27 = vmul.u32 %v2522_v48, %v2558_v51 }
  0xd3   : > { %v977_v29 = vand.u32 65535, %v973_v17  ;;  %v978_v31 = vshrl.u32 %v973_v17, 16  ;;  %v1003_v39 = vmul.u32 %v999_v24, %v976_v26  ;;  %v1001_v25 = vmul.u32 %v999_v24, %v975_v21 }
  0xd4   : > { %v713_v36 = vsel %vm711_vm15, %v712_v60, %v708_v52  ;;  %v1002_v38 = vmul.u32 %v1000_v1, %v975_v21  ;;  %v1004_v41 = vmul.u32 %v1000_v1, %v976_v26  ;;  %vm618_vm8 = vcmp.lt.s32.totalorder %v2505_v33, 0 }
  0xd5   : > { %v714_v40 = vadd.s32 %v713_v36, %v709_v27  ;;  %v980_v42 = vmul.u32 %v978_v31, %v975_v21  ;;  %v981_v43 = vmul.u32 %v977_v29, %v976_v26  ;;  %v979_v57 = vmul.u32 %v977_v29, %v975_v21 }
  0xd6   : > { %v1005_v18 = vshll.u32 %v1002_v38, 16  ;;  %v982_v32 = vmul.u32 %v978_v31, %v976_v26  ;;  %v1007_v45 = vshll.u32 %v1003_v39, 16  ;;  %v1006_v2 = vshrl.u32 %v1002_v38, 16 }
  0xd7   : > { %v715_v55 = vadd.s32 536870912, %v714_v40  ;;  %v983_v56 = vshll.u32 %v980_v42, 16  ;;  %v985_v44 = vshll.u32 %v981_v43, 16  ;;  %v984_v8 = vshrl.u32 %v980_v42, 16 }
  0xd8   : > { %vm1009_vm0 = vc.u32 %v1001_v25, %v1005_v18  ;;  %v1011_v46 = vadd.s32 %v1005_v18, %v1001_v25  ;;  %v986_v62 = vshrl.u32 %v981_v43, 16  ;;  %v1008_v30 = vshrl.u32 %v1003_v39, 16 }
  0xd9   : > { %v2620_v48 = vshrl.u32 %v715_v55, 30  ;;  %vm987_vm1 = vc.u32 %v979_v57, %v983_v56  ;;  %v989_v51 = vadd.s32 %v983_v56, %v979_v57  ;;  %v1010_v47 = vsel %vm1009_vm0, 1, %v2280_v4 }
  0xda   : > { %v988_v6 = vsel %vm987_vm1, 1, %v2280_v4  ;;  %v1012_v53 = vadd.s32 %v1010_v47, %v1004_v41  ;;  %vm1013_vm2 = vc.u32 %v1011_v46, %v1007_v45  ;;  %v1015_v10 = vadd.s32 %v1011_v46, %v1007_v45 }
  0xdb   : > { %v717_v54 = vshll.u32 %v2620_v48, 30  ;;  %v990_v59 = vadd.s32 %v988_v6, %v982_v32  ;;  %vm991_vm3 = vc.u32 %v989_v51, %v985_v44  ;;  %v1014_v63 = vsel %vm1013_vm2, 1, %v2280_v4 }
  0xdc   : > { %v992_v61 = vsel %vm991_vm3, 1, %v2280_v4  ;;  %v1016_v0 = vadd.s32 %v1014_v63, %v1012_v53  ;;  %v1019_v27 = vmul.u32 %v2532_v58, %v2604_v13  ;;  %v710_v29 = vadd.s32 %v2587_v50, %v2596_v11 }
  0xdd   : > { %v718_v15 = vsub.s32 %v714_v40, %v717_v54  ;;  %v994_v19 = vadd.s32 %v992_v61, %v990_v59  ;;  %v740_v44 = vsub.s32 4, %v2620_v48  ;;  %vm617_vm9 = vcmp.le.f32.partialorder %v616_v35, 0.7853982 }
  0xde   : > { %v1017_v12 = vadd.s32 %v1016_v0, %v1006_v2  ;;  %v2643_v59 = vmul.f32 %v2493_v22, %v597_v20  ;;  %vm928_vm11 = vcmp.lt.s32.totalorder %v2507_v34, 0  ;;  %vm759_vm2 = vweird.f32 %v2505_v33 }
  0xdf   : > { %vm719_vm4 = vcmp.lt.s32.totalorder %v718_v15, 0  ;;  %v720_v7 = vsub.s32 0, %v718_v15  ;;  %v995_v23 = vadd.s32 %v994_v19, %v984_v8  ;;  %v741_v6 = vsel %vm618_vm8, %v740_v44, %v2620_v48 }
  0xe0   : > { %v1018_v21 = vadd.s32 %v1017_v12, %v1008_v30  ;;  %v1364_v8 = vrot.slane %v2479_v14, 2  ;;  %v1424_v48 = vrot.slane %v2643_v59, 2  ;;  %vm2664_vm3 = vcmp.le.f32.partialorder %v926_v37, 0.7853982 }
  0xe1   : > { %v721_v52 = vsel %vm719_vm4, %v720_v7, %v718_v15  ;;  %v996_v16 = vadd.s32 %v995_v23, %v986_v62 }
  0xe2   : > { %v722_v49 = vclz %v721_v52  ;;  %v1022_v17 = vadd.s32 1, %v1018_v21 }
  0xe3   : > { %v1020_v60 = vadd.s32 %v1015_v10, %v996_v16  ;;  %vm1021_vm5 = vc.u32 %v996_v16, %v1015_v10  ;;  %v2647_v16 = vperm.slane %v1364_v8, 0 }
  0xe4   : > { %v2006_v24 = vadd.s32 4294967294, %v722_v49  ;;  %v1023_v26 = vsel %vm1021_vm5, %v1022_v17, %v1018_v21 }
  0xe5   : > { %v1024_v38 = vadd.s32 %v1023_v26, %v1019_v27 }
  0xe6   : > { %vm2007_vm6 = vcmp.lt.s32.totalorder %v2006_v24, 0 }
  0xe7   : > { %v725_v1 = vsel %vm2007_vm6, 0, %v2006_v24  ;;  %v1025_v43 = vadd.s32 536870912, %v1024_v38 }
  0xe8   : > { %v726_v31 = vsub.s32 32, %v725_v1  ;;  %v730_v36 = vsub.s32 4294967266, %v725_v1  ;;  %v727_v39 = vshll.u32 %v718_v15, %v725_v1  ;;  %v743_v15 = vsel %vm617_vm9, 0, %v741_v6 }
  0xe9   : > { %v2631_v18 = vshrl.u32 %v1025_v43, 30  ;;  %v914_v20 = vadd.s32 3, %v743_v15  ;;  %v2650_v1 = vperm.slane %v1424_v48, 0 }
  0xea   : > { %v728_v40 = vshrl.u32 %v710_v29, %v726_v31  ;;  %v731_v42 = vadd.s32 127, %v730_v36  ;;  %v760_v31 = vand.u32 3, %v743_v15 }
  0xeb   : > { %v1027_v57 = vshll.u32 %v2631_v18, 30 }
  0xec   : > { %v729_v25 = vor.u32 %v728_v40, %v727_v39  ;;  %v732_v41 = vshll.u32 %v731_v42, 23  ;;  %v915_v40 = vand.u32 3, %v914_v20  ;;  %v1235_v42 = vperm.slane %v2476_v9, 2 }
  0xed   : > { %v1028_v58 = vsub.s32 %v1024_v38, %v1027_v57  ;;  %vm761_vm12 = vcmp.lt.s32.totalorder %v760_v31, 2  ;;  %vm762_vm13 = vcmp.eq.s32.totalorder %v760_v31, 0  ;;  %vm765_vm15 = vcmp.eq.s32.totalorder %v760_v31, 2 }
  0xee   : > { %v733_v55 = vor.u32 4788187, %v732_v41  ;;  %v736_v56 = vcvt.s32.f32 %v729_v25  ;;  %vm916_vm14 = vcmp.lt.s32.totalorder %v915_v40, 2  ;;  %vm917_vm0 = vcmp.eq.s32.totalorder %v915_v40, 0 }
  0xef   : > { %vm1029_vm7 = vcmp.lt.s32.totalorder %v1028_v58, 0  ;;  %v1030_v50 = vsub.s32 0, %v1028_v58  ;;  %vm920_vm1 = vcmp.eq.s32.totalorder %v915_v40, 2  ;;  %v1050_v9 = vsub.s32 4, %v2631_v18 }
  0xf0   : > { %v734_v32 = vand.u32 2147483647, %v733_v55 }
  0xf1   : > { %v1031_v45 = vsel %vm1029_vm7, %v1030_v50, %v1028_v58 }
  0xf2   : > { %v737_v13 = vmul.f32 %v736_v56, %v734_v32  ;;  %v1032_v51 = vclz %v1031_v45 }
  0xf4   : > { %v738_v11 = vxor.u32 2147483648, %v737_v13  ;;  %v2012_v54 = vadd.s32 4294967294, %v1032_v51 }
  0xf6   : > { %v739_v46 = vsel %vm618_vm8, %v738_v11, %v737_v13  ;;  %vm2013_vm10 = vcmp.lt.s32.totalorder %v2012_v54, 0 }
  0xf7   : > { %v742_v47 = vsel %vm617_vm9, %v2505_v33, %v739_v46  ;;  %v1035_v0 = vsel %vm2013_vm10, 0, %v2012_v54  ;;  %vm1316_vm10 = vcmask 7168  }
  0xf8   : > { %v744_v53 = vmul.f32 %v742_v47, %v742_v47  ;;  %v1036_v7 = vsub.s32 32, %v1035_v0  ;;  %v1040_v62 = vsub.s32 4294967266, %v1035_v0  ;;  %v1037_v12 = vshll.u32 %v1028_v58, %v1035_v0 }
  0xfa   : > { %v752_v61 = vmul.f32 -0.00019511016, %v744_v53  ;;  %v745_v63 = vmul.f32 -0.001358992, %v744_v53  ;;  %v1038_v52 = vshrl.u32 %v1020_v60, %v1036_v7  ;;  %v1041_v22 = vadd.s32 127, %v1040_v62 }
  0xfb   : > { %v1355_v19 = vpop.permute.xlu2 %1354 }
  0xfc   : > { %v753_v35 = vadd.f32 0.008332121, %v752_v61  ;;  %v746_v2 = vadd.f32 0.041655596, %v745_v63  ;;  %v1039_v21 = vor.u32 %v1038_v52, %v1037_v12  ;;  %v1042_v24 = vshll.u32 %v1041_v22, 23 }
  0xfd   : > { %v1375_v26 = vsub.f32 %v1355_v19, %v2647_v16  ;;  %v1051_v19 = vsel %vm928_vm11, %v1050_v9, %v2631_v18  ;;  %v1425_v12 = vperm.slane %v2643_v59, 0 }
  0xfe   : > { %v754_v23 = vmul.f32 %v753_v35, %v744_v53  ;;  %v747_v30 = vmul.f32 %v746_v2, %v744_v53  ;;  %v1043_v36 = vor.u32 4788187, %v1042_v24  ;;  %v1046_v25 = vcvt.s32.f32 %v1039_v21 }
  0xff   : > { %v1381_v55 = vmul.f32 %v1375_v26, %v1375_v26  ;;  %v1363_v26 = vrot.slane %v2479_v14, 1 }
 0x100   : > { %v755_v49 = vadd.f32 -0.16666654, %v754_v23  ;;  %v748_v10 = vadd.f32 -0.4999988, %v747_v30  ;;  %v1044_v43 = vand.u32 2147483647, %v1043_v36 }
 0x102   : > { %v756_v17 = vmul.f32 %v755_v49, %v744_v53  ;;  %v749_v27 = vmul.f32 %v748_v10, %v744_v53  ;;  %v1047_v56 = vmul.f32 %v1046_v25, %v1044_v43  ;;  %v1053_v49 = vsel %vm2664_vm3, 0, %v1051_v19 }
 0x103   : > { %v1415_v29 = vpop.permute.xlu2 %1414  ;;  %v1366_v25 = vperm.slane %v1363_v26, 0 }
 0x104   : > { %v757_v38 = vadd.f32 1.0, %v756_v17  ;;  %v1435_v60 = vsub.f32 %v1415_v29, %v2650_v1  ;;  %v750_v39 = vadd.f32 1.0, %v749_v27  ;;  %v1048_v50 = vxor.u32 2147483648, %v1047_v56 }
 0x105   : > { %v1365_v17 = vperm.slane %v2479_v14, 0 }
 0x106   : > { %v758_v41 = vmul.f32 %v757_v38, %v742_v47  ;;  %v1441_v57 = vmul.f32 %v1435_v60, %v1435_v60  ;;  %v766_v32 = vxor.u32 2147483648, %v750_v39  ;;  %v1049_v6 = vsel %vm928_vm11, %v1048_v50, %v1047_v56 }
 0x107   : > { %v1052_v33 = vsel %vm2664_vm3, %v2507_v34, %v1049_v6  ;;  %v1224_v38 = vadd.s32 3, %v1053_v49  ;;  %v1423_v60 = vrot.slane %v2643_v59, 1  ;;  %vm1467_vm11 = vcmask 130048  }
 0x108   : > { %v2655_v58 = vadd.f32 %v1441_v57, %v1381_v55  ;;  %v763_v13 = vxor.u32 2147483648, %v758_v41  ;;  %v922_v44 = vsel %vm920_vm1, %v766_v32, %v758_v41  ;;  %v767_v46 = vsel %vm765_vm15, %v766_v32, %v758_v41 }
 0x109   : > { %v1054_v0 = vmul.f32 %v1052_v33, %v1052_v33  ;;  %v1070_v32 = vand.u32 3, %v1053_v49  ;;  %v1225_v56 = vand.u32 3, %v1224_v38  ;;  %v1426_v14 = vperm.slane %v1423_v60, 0 }
 0x10a   : > { %v919_v11 = vsel %vm917_vm0, %v750_v39, %v763_v13  ;;  %v764_v45 = vsel %vm762_vm13, %v750_v39, %v763_v13  ;;  %vm1584_vm13 = vcmask 130112   ;;  %vm1594_vm15 = vcmask 1042434  }
 0x10b   : > { %v923_v51 = vsel %vm916_vm14, %v919_v11, %v922_v44  ;;  %v768_v47 = vsel %vm761_vm12, %v764_v45, %v767_v46  ;;  %v1389_v48 = vpop.permute.xlu2 %1388  ;;  %v1055_v23 = vmul.f32 -0.001358992, %v1054_v0  ;;  %v1062_v30 = vmul.f32 -0.00019511016, %v1054_v0 }
 0x10c   : > { %v924_v53 = vsel %vm759_vm2, nan, %v923_v51  ;;  %v769_v54 = vsel %vm759_vm2, nan, %v768_v47  ;;  %v1431_v21 = vsub.f32 %v1389_v48, %v1425_v12  ;;  %vm1075_vm4 = vcmp.eq.s32.totalorder %v1070_v32, 2 }
 0x10d   : > { %v1237_v63 = vmul.f32 %v1235_v42, %v924_v53  ;;  %v1236_v15 = vmul.f32 %v1235_v42, %v769_v54  ;;  %v1056_v18 = vadd.f32 0.041655596, %v1055_v23  ;;  %v1063_v10 = vadd.f32 0.008332121, %v1062_v30 }
 0x10e   : > { %v1437_v42 = vmul.f32 %v1431_v21, %v1431_v21  ;;  %vm1230_vm5 = vcmp.eq.s32.totalorder %v1225_v56, 2  ;;  %vm1071_vm6 = vcmp.lt.s32.totalorder %v1070_v32, 2  ;;  %vm1072_vm7 = vcmp.eq.s32.totalorder %v1070_v32, 0 }
 0x10f   : > { %v1277_v35 = vperm.slane %v1237_v63, 0  ;;  %v1290_v8 = vperm.slane %v1237_v63, 1  ;;  %v1264_v2 = vperm.slane %v1236_v15, 2  ;;  %v1303_v7 = vperm.slane %v1237_v63, 2 }
 0x110   : > { %v1238_v37 = vperm.slane %v1236_v15, 0  ;;  %v1251_v62 = vperm.slane %v1236_v15, 1  ;;  %v1057_v29 = vmul.f32 %v1056_v18, %v1054_v0  ;;  %v1064_v31 = vmul.f32 %v1063_v10, %v1054_v0 }
 0x111   : > { %v2141_v52 = vpack.i.bf16 %v1290_v8, %v1277_v35  ;;  %v2125_v20 = vpack.i.bf16 %v1303_v7, %v1264_v2  ;;  %vm1227_vm8 = vcmp.eq.s32.totalorder %v1225_v56, 0  ;;  %vm1226_vm9 = vcmp.lt.s32.totalorder %v1225_v56, 2 }
 0x112   : > { %v2675_v22 = vpack.i.bf16 %v1251_v62, %v1238_v37  ;;  %v1058_v39 = vadd.f32 -0.4999988, %v1057_v29  ;;  %v1065_v40 = vadd.f32 -0.16666654, %v1064_v31  ;;  %vm1670_vm12 = vcmask 1042432  }
 0x113   : > { %2142 = vperm.xlu0 %2123, %v2141_v52   ;;  %2126 = vperm.xlu1 %2124, %v2125_v20   ;;  %v1342_v24 = vpop.permute.xlu1 %1341  ;;  %vm1592_vm14 = vcmask 1041409   ;;  %vm1069_vm0 = vweird.f32 %v2507_v34  ;;  %vm1663_vm1 = vcmask 23552   ;;  %vm1738_vm2 = vcmask 122880  }
 0x114   : > { %2137 = vperm.xlu2 %2122, %v2675_v22   ;;  %v1329_v27 = vpop.permute.xlu0 %1328  ;;  %v1059_v41 = vmul.f32 %v1058_v39, %v1054_v0  ;;  %v1066_v55 = vmul.f32 %v1065_v40, %v1054_v0  ;;  %v1373_v13 = vsub.f32 %v1342_v24, %v1366_v25  ;;  %vm1883_vm3 = vcmask (%p1740_p1), 40960  }
 0x115   : > { %v1371_v36 = vsub.f32 %v1329_v27, %v1365_v17 }
 0x116   : > { %v1060_v50 = vadd.f32 1.0, %v1059_v41  ;;  %v1067_v9 = vadd.f32 1.0, %v1066_v55  ;;  %v1379_v47 = vmul.f32 %v1373_v13, %v1373_v13 }
 0x117   : > { %v1377_v43 = vmul.f32 %v1371_v36, %v1371_v36 }
 0x118   : > { %v1068_v46 = vmul.f32 %v1067_v9, %v1052_v33  ;;  %v1076_v51 = vxor.u32 2147483648, %v1060_v50 }
 0x119   : > { %v2685_v57 = vadd.f32 %v1437_v42, %v1377_v43  ;;  %v1453_v43 = vsub.f32 0.0, %v2655_v58 }
 0x11a   : > { %v1073_v53 = vxor.u32 2147483648, %v1068_v46  ;;  %v1077_v54 = vsel %vm1075_vm4, %v1076_v51, %v1068_v46  ;;  %v1232_v61 = vsel %vm1230_vm5, %v1076_v51, %v1068_v46 }
 0x11b   : > { %2130 = vset.pattern.permute.xlu1 %v2464_v5  ;;  %v1361_v11 = vpop.permute.xlu2 %1360  ;;  %v1402_v44 = vpop.permute.xlu1 %1401  ;;  %2157 = vset.pattern.permute.xlu0 %v2280_v4  ;;  %v1449_v41 = vsub.f32 0.0, %v2685_v57 }
 0x11c   : > { %2151 = vset.pattern.permute.xlu2 %v2464_v5  ;;  %v1433_v45 = vsub.f32 %v1402_v44, %v1426_v14  ;;  %v1074_v15 = vsel %vm1072_vm7, %v1060_v50, %v1073_v53  ;;  %v1229_v19 = vsel %vm1227_vm8, %v1060_v50, %v1073_v53  ;;  %v1376_v33 = vsub.f32 %v1361_v11, %v2647_v16 }
 0x11d   : > { %v2690_v0 = vsel %vm1071_vm6, %v1074_v15, %v1077_v54  ;;  %v2692_v35 = vsel %vm1226_vm9, %v1229_v19, %v1232_v61  ;;  %v1455_v13 = vmul.f32 1.442695, %v1449_v41 }
 0x11e   : > { %v1439_v6 = vmul.f32 %v1433_v45, %v1433_v45  ;;  %v1382_v48 = vmul.f32 %v1376_v33, %v1376_v33 }
 0x120   : > { %v1445_v63 = vadd.f32 %v1439_v6, %v1379_v47 }
 0x122   : > { %v1451_v55 = vsub.f32 0.0, %v1445_v63 }
 0x123   : > { %2132 = vperm.xlu1 %2130, %v2125_v20   ;;  %v1335_v8 = vpop.permute.xlu2 %1334 }
 0x124   : > { %2153 = vperm.xlu2 %2151, %v2141_v52   ;;  %v1421_v2 = vpop.permute.xlu0 %1420  ;;  %v1372_v23 = vsub.f32 %v1335_v8, %v1365_v17  ;;  %v1459_v9 = vmul.f32 1.442695, %v1451_v55 }
 0x125   : > { %v1436_v7 = vsub.f32 %v1421_v2, %v2650_v1 }
 0x126   : > { %v1378_v52 = vmul.f32 %v1372_v23, %v1372_v23 }
 0x127   : > { %v1442_v37 = vmul.f32 %v1436_v7, %v1436_v7 }
 0x129   : > { %v1448_v62 = vadd.f32 %v1442_v37, %v1382_v48  ;;  %v2287_v37 = vmov 1  }
 0x12b   : > { %2147 = vperm.xlu1 %2130, %v2675_v22   ;;  %v1395_v30 = vpop.permute.xlu2 %1394  ;;  %v1454_v32 = vsub.f32 0.0, %v1448_v62 }
 0x12c   : > { %v1348_v49 = vpop.permute.xlu1 %1347  ;;  %v1432_v18 = vsub.f32 %v1395_v30, %v1425_v12  ;;  %v1408_v10 = vpop.permute.xlu0 %1407  ;;  %2158 = vset.pattern.permute.xlu2 %v2280_v4 }
 0x12d   : > { %v1374_v16 = vsub.f32 %v1348_v49, %v1366_v25  ;;  %v1434_v20 = vsub.f32 %v1408_v10, %v1426_v14  ;;  %v1463_v25 = vmul.f32 1.442695, %v1453_v43  ;;  %v1465_v11 = vmul.f32 1.442695, %v1454_v32 }
 0x12e   : > { %v1438_v21 = vmul.f32 %v1432_v18, %v1432_v18 }
 0x12f   : > { %v1380_v24 = vmul.f32 %v1374_v16, %v1374_v16  ;;  %v1440_v1 = vmul.f32 %v1434_v20, %v1434_v20  ;;  %2170 = vpow2.f32 %v1463_v25 }
 0x130   : > { %v1444_v26 = vadd.f32 %v1438_v21, %v1378_v52  ;;  %2172 = vpow2.f32 %v1455_v13 }
 0x131   : > { %v1446_v27 = vadd.f32 %v1440_v1, %v1380_v24  ;;  %2174 = vpow2.f32 %v1459_v9  ;;  %v1662_v24 = vld [vmem:[%s2842_s4] sm:$0x7] }
 0x132   : > { %v1450_v46 = vsub.f32 0.0, %v1444_v26  ;;  %2176 = vpow2.f32 %v1465_v11  ;;  %2023 = vmatpush.msk.msra.mxu3 %vm1670_vm12, %v1662_v24  ;;  %v1736_v24 = vld [vmem:[%s1735_s16] sm:$0x1] }
 0x133   : > { %v1452_v58 = vsub.f32 0.0, %v1446_v27  ;;  %2160 = vset.pattern.permute.xlu1 %v2287_v37 }
 0x134   : > { %v1457_v51 = vmul.f32 1.442695, %v1450_v46  ;;  %v1079_v46 = vsel %vm1069_vm0, nan, %v2690_v0  ;;  %v2168_v0 = vld [vmem:[%s2843_s5] ss:$0 sm:$0xff] }
 0x135   : > { %v2171_v45 = vpop.eup %2170  ;;  %v1461_v63 = vmul.f32 1.442695, %v1452_v58  ;;  %v1234_v58 = vsel %vm1069_vm0, nan, %v2692_v35 }
 0x136   : > { %v2173_v15 = vpop.eup %2172  ;;  %2178 = vpow2.f32 %v1457_v51 }
 0x137   : > { %v2175_v8 = vpop.eup %2174  ;;  %2180 = vpow2.f32 %v1461_v63 }
 0x138   : > { %v2177_v2 = vpop.eup %2176 }
 0x13c   : > { %v2179_v7 = vpop.eup %2178 }
 0x13d   : > { %v2181_v48 = vpop.eup %2180 }
 0x16e   : > { %v2138_v29 = vpop.permute.xlu2 %2137 }
 0x16f   : > { %v2140_v17 = vunpack.i.h.bf16 %v2138_v29  ;;  %v2139_v31 = vunpack.i.l.bf16 %v2138_v29 }
 0x17e   : > { %v2154_v57 = vpop.permute.xlu2 %2153 }
 0x17f   : > { %v2156_v6 = vunpack.i.h.bf16 %v2154_v57  ;;  %v2155_v53 = vunpack.i.l.bf16 %v2154_v57 }
 0x185   : > { %v2143_v22 = vpop.permute.xlu0 %2142  ;;  %v2127_v36 = vpop.permute.xlu1 %2126 }
 0x186   : > { %v2145_v38 = vunpack.i.h.bf16 %v2143_v22  ;;  %v2144_v59 = vunpack.i.l.bf16 %v2143_v22  ;;  %v2129_v12 = vunpack.i.h.bf16 %v2127_v36  ;;  %v2128_v60 = vunpack.i.l.bf16 %v2127_v36 }
 0x188   : > { %v1318_v39 = vsel %vm1316_vm10, %v2139_v31, %v2144_v59  ;;  %v1320_v40 = vsel %vm1316_vm10, %v2140_v17, %v2145_v38  ;;  %v1322_v42 = vsel %vm1316_vm10, %v2128_v60, %v2129_v12 }
 0x189   : > { %1488 = vmatpush.msra.mxu0 %v1318_v39  ;;  %1517 = vmatpush.msra.mxu1 %v1320_v40 }
 0x18a   : > { %1546 = vmatpush.msra.mxu2 %v1322_v42 }
 0x195   : > { %v2133_v56 = vpop.permute.xlu1 %2132 }
 0x196   : > { %v2135_v14 = vunpack.i.h.bf16 %v2133_v56  ;;  %v2134_v50 = vunpack.i.l.bf16 %v2133_v56 }
 0x198   : > { %v1321_v44 = vsel %vm1316_vm10, %v2134_v50, %v2135_v14 }
 0x199   : > { %1547 = vmatpush.msra.mxu2 %v1321_v44 }
 0x19a   : > { %2021 = vmatmul.msk.f32.vlgmr.msra.gmra.mxu2 %vm1467_vm11, %v2171_v45 }
 0x19d   : > { %v2148_v47 = vpop.permute.xlu1 %2147 }
 0x19e   : > { %v2150_v54 = vunpack.i.h.bf16 %v2148_v47  ;;  %v2149_v61 = vunpack.i.l.bf16 %v2148_v47 }
 0x1a0   : > { %v1317_v19 = vsel %vm1316_vm10, %v2149_v61, %v2155_v53  ;;  %v1319_v33 = vsel %vm1316_vm10, %v2150_v54, %v2156_v6  ;;  %v2182_v53 = vld [vmem:[%s2449_s30] sm:$0x7] }
 0x1a1   : > { %1489 = vmatpush.msra.mxu0 %v1317_v19  ;;  %1518 = vmatpush.msra.mxu1 %v1319_v33  ;;  %v1697_v54 = vperm.slane %v2182_v53, 2 }
 0x1a2   : > { %2017 = vmatmul.msk.f32.vlgmr.msra.gmra.mxu0 %vm1467_vm11, %v2173_v15  ;;  %2019 = vmatmul.msk.f32.vlgmr.msra.gmra.mxu1 %vm1467_vm11, %v2175_v8  ;;  %v2169_v8 = vld [vmem:[%s2844_s6] ss:$0 sm:$0xff] }
 0x1a3   : > { %2022 = vmatmul.msk.f32.gmra.mxu2 %vm1467_vm11, %v2177_v2 }
 0x1aa   : > { %2018 = vmatmul.msk.f32.gmra.mxu0 %vm1467_vm11, %v2179_v7  ;;  %2020 = vmatmul.msk.f32.gmra.mxu1 %vm1467_vm11, %v2181_v48 }
 0x21d   : > { %v1549_v49 = vpop.f32.mrf.mxu2 }
 0x21f   : > { %v1491_v62 = vpop.f32.mrf.mxu0  ;;  %v1520_v23 = vpop.f32.mrf.mxu1 }
 0x220   : > { %1605 = vperm.xlu1 %2160, %v1520_v23   ;;  %1568 = vperm.xlu2 %2158, %v1520_v23  }
 0x221   : > { %1562 = vperm.xlu0 %2157, %v1491_v62  }
 0x226   : > { %v1552_v10 = vpop.f32.mrf.mxu2 }
 0x227   : > { %v1494_v30 = vpop.f32.mrf.mxu0  ;;  %v1523_v18 = vpop.f32.mrf.mxu1 }
 0x228   : > { %2161 = vset.pattern.permute.xlu1 %v2280_v4  ;;  %2159 = vset.pattern.permute.xlu2 %v2287_v37 }
 0x229   : > { %2162 = vset.pattern.permute.xlu0 %v2287_v37  ;;  %1574 = vperm.xlu1 %2161, %v1549_v49  }
 0x22a   : > { %1599 = vperm.xlu2 %2159, %v1491_v62   ;;  %1602 = vperm.xlu0 %2162, %v1494_v30  }
 0x231   : > { %1565 = vperm.xlu1 %2161, %v1494_v30  }
 0x232   : > { %1608 = vperm.xlu2 %2159, %v1523_v18   ;;  %1611 = vperm.xlu0 %2162, %v1549_v49  }
 0x239   : > { %1571 = vperm.xlu1 %2161, %v1523_v18  }
 0x23a   : > { %2163 = vset.pattern.permute.xlu2 %v2280_v4  ;;  %2165 = vset.pattern.permute.xlu0 %v2464_v5  ;;  %v1580_v5 = vand.u32 127, %v1239_v3 }
 0x23b   : > { %1577 = vperm.xlu2 %2163, %v1552_v10  }
 0x23c   : > { %v1582_v29 = vadd.s32 4294967288, %v1580_v5 }
 0x241   : > { %2164 = vset.pattern.permute.xlu1 %v2287_v37 }
 0x242   : > { %1614 = vperm.xlu1 %2164, %v1552_v10   ;;  %1702 = vperm.xlu0 %2165, %v1697_v54  }
 0x24a   : > { %2166 = vset.pattern.permute.xlu1 %v2501_v28  ;;  %2167 = vset.pattern.permute.xlu0 %v2501_v28 }
 0x252   : > { %1708 = vperm.xlu1 %2166, %v1697_v54  }
 0x27a   : > { %v1569_v16 = vpop.permute.xlu2 %1568 }
 0x27b   : > { %v1586_v22 = vperm.slane %v1569_v16, %v1580_v5 }
 0x284   : > { %v1600_v21 = vpop.permute.xlu2 %1599 }
 0x285   : > { %v1616_v40 = vperm.slane %v1600_v21, %v1580_v5 }
 0x28c   : > { %v1609_v4 = vpop.permute.xlu2 %1608 }
 0x28d   : > { %v1620_v55 = vperm.slane %v1609_v4, %v1582_v29  ;;  %v1753_v4 = vld [vmem:[%s2845_s7 + $0x18] sm:$0xff] (%p1740_p1) }
 0x28e   : > { %1771 = vmatpush.msra.mxu0 (%p1740_p1), %v1753_v4 }
 0x292   : > { %v1606_v20 = vpop.permute.xlu1 %1605 }
 0x293   : > { %v1563_v1 = vpop.permute.xlu0 %1562  ;;  %v1619_v42 = vperm.slane %v1606_v20, %v1580_v5 }
 0x294   : > { %v1581_v38 = vperm.slane %v1563_v1, %v1580_v5 }
 0x295   : > { %v1578_v59 = vpop.permute.xlu2 %1577  ;;  %v1621_v9 = vsel %vm1584_vm13, %v1620_v55, %v1619_v42  ;;  %v1805_v55 = vld [vmem:[%s2848_s10] sm:$0x1] (%p1740_p1) }
 0x296   : > { %v1590_v3 = vperm.slane %v1578_v59, %v1582_v29  ;;  %v1803_v59 = vld [vmem:[%s2847_s9] sm:$0xff] (%p1740_p1) }
 0x29b   : > { %v1575_v52 = vpop.permute.xlu1 %1574 }
 0x29c   : > { %v1603_v27 = vpop.permute.xlu0 %1602  ;;  %v1589_v39 = vperm.slane %v1575_v52, %v1580_v5 }
 0x29d   : > { %v1617_v12 = vperm.slane %v1603_v27, %v1582_v29  ;;  %v1752_v27 = vld [vmem:[%s2845_s7 + $0x10] sm:$0xff] (%p1740_p1) }
 0x29e   : > { %v1591_v13 = vsel %vm1584_vm13, %v1590_v3, %v1589_v39  ;;  %1772 = vmatpush.msra.mxu0 (%p1740_p1), %v1752_v27  ;;  %v1800_v39 = vld [vmem:[%s2846_s8] sm:$0x1] (%p1740_p1) }
 0x29f   : > { %v1618_v32 = vsel %vm1584_vm13, %v1617_v12, %v1616_v40  ;;  %v1830_v3 = vld [vmem:[%s2849_s11] sm:$0xff] (%p1740_p1) }
 0x2a0   : > { %v1625_v44 = vsel %vm1592_vm14, %v1621_v9, %v1618_v32 }
 0x2a3   : > { %v1566_v26 = vpop.permute.xlu1 %1565 }
 0x2a4   : > { %v1583_v36 = vperm.slane %v1566_v26, %v1582_v29  ;;  %v1612_v43 = vpop.permute.xlu0 %1611 }
 0x2a5   : > { %v1622_v14 = vperm.slane %v1612_v43, %v1580_v5  ;;  %v1748_v5 = vld [vmem:[%s2845_s7 + $0x8] sm:$0xff] (%p1740_p1) }
 0x2a6   : > { %v1585_v25 = vsel %vm1584_vm13, %v1583_v36, %v1581_v38  ;;  %1794 = vmatpush.msra.mxu1 (%p1740_p1), %v1748_v5  ;;  %v1804_v38 = vld [vmem:[%s2847_s9 + $0x8] sm:$0xff] (%p1740_p1) }
 0x2a7   : > { %1823 = vmatpush.msra.mxu2 (%p1740_p1), %v1804_v38 }
 0x2a9   : > { %1824 = vmatpush.msra.mxu2 (%p1740_p1), %v1803_v59 }
 0x2ab   : > { %v1572_v17 = vpop.permute.xlu1 %1571 }
 0x2ac   : > { %v1587_v31 = vperm.slane %v1572_v17, %v1582_v29 }
 0x2ae   : > { %v1588_v60 = vsel %vm1584_vm13, %v1587_v31, %v1586_v22 }
 0x2af   : > { %v1593_v41 = vsel %vm1592_vm14, %v1588_v60, %v1585_v25  ;;  %v1831_v25 = vld [vmem:[%s2849_s11 + $0x8] sm:$0xff] (%p1740_p1) }
 0x2b0   : > { %v1595_v11 = vsel %vm1594_vm15, %v1591_v13, %v1593_v41  ;;  %v1858_v41 = vld [vmem:[%s2851_s13 + $0x8] sm:$0xff] (%p1740_p1) }
 0x2b1   : > { %v1597_v51 = vmul.f32 %v1595_v11, %v1079_v46  ;;  %1877 = vmatpush.msrb.mxu0 (%p1740_p1), %v1858_v41 }
 0x2b4   : > { %v1615_v56 = vpop.permute.xlu1 %1614  ;;  %v1703_v35 = vpop.permute.xlu0 %1702 }
 0x2b5   : > { %v1623_v50 = vperm.slane %v1615_v56, %v1582_v29  ;;  %v1714_v63 = vmul.f32 %v2168_v0, %v1703_v35  ;;  %v1747_v29 = vld [vmem:[%s2845_s7] sm:$0xff] (%p1740_p1) }
 0x2b6   : > { %1795 = vmatpush.msra.mxu1 (%p1740_p1), %v1747_v29 }
 0x2b7   : > { %v1624_v45 = vsel %vm1584_vm13, %v1623_v50, %v1622_v14  ;;  %v1857_v14 = vld [vmem:[%s2851_s13] sm:$0xff] (%p1740_p1) }
 0x2b8   : > { %v1626_v57 = vsel %vm1594_vm15, %v1624_v45, %v1625_v44  ;;  %1878 = vmatpush.msrb.mxu0 (%p1740_p1), %v1857_v14  ;;  %v1832_v50 = vld [vmem:[%s2850_s12] sm:$0x1] (%p1740_p1) }
 0x2b9   : > { %v1628_v47 = vmul.f32 %v1626_v57, %v1234_v58  ;;  %v1859_v45 = vld [vmem:[%s2852_s14] sm:$0x1] (%p1740_p1) }
 0x2bb   : > { %v1629_v6 = vadd.f32 %v1628_v47, %v1597_v51 }
 0x2bd   : > { %1630 = vxpose.xlu2.b32.start.end [1/1] (short) (narrow) %v1629_v6, 16 }
 0x2c4   : > { %v1709_v19 = vpop.permute.xlu1 %1708 }
 0x2c5   : > { %v1715_v28 = vmul.f32 %v2168_v0, %v1709_v19 }
 0x356   : > { %v1646_v61 = vpop.trf.xlu2 }
 0x357   : > { %2024 = vmatmul.msk.f32.vlgmr.msra.gmra.mxu3 %vm1663_vm1, %v1646_v61 }
 0x358   : > { %1850 = vmatpush.msra.mxu3 (%p1740_p1), %v1831_v25 }
 0x35a   : > { %1851 = vmatpush.msra.mxu3 (%p1740_p1), %v1830_v3 }
 0x35e   : > { %v1647_v34 = vpop.trf.xlu2 }
 0x35f   : > { %2025 = vmatmul.msk.f32.gmra.mxu3 %vm1663_vm1, %v1647_v34 }
 0x3da   : > { %v1691_v15 = vpop.f32.mrf.mxu3 }
 0x3db   : > { %v1716_v33 = vadd.f32 %v1714_v63, %v1691_v15 }
 0x3dd   : > { %v1722_v2 = vadd.f32 %v2169_v8, %v1716_v33 }
 0x3df   : > { %v1724_v37 = vmax.f32 %v1722_v2, 0.0 }
 0x3e1   : > { %v1726_v30 = vsel %vm1467_vm11, %v1724_v37, 0.0 }
 0x3e2   : > { %v1694_v7 = vpop.f32.mrf.mxu3 }
 0x3e3   : > { %v1717_v48 = vadd.f32 %v1715_v28, %v1694_v7 }
 0x3e5   : > { %v1723_v62 = vadd.f32 %v2169_v8, %v1717_v48 }
 0x3e7   : > { %v1725_v23 = vmax.f32 %v1723_v62, 0.0 }
 0x3e9   : > { %v1727_v49 = vsel %vm1467_vm11, %v1725_v23, 0.0 }
 0x3ea   : > { %v1728_v18 = vadd.f32 %v1727_v49, %v1726_v30 }
 0x3ec   : > { %v1729_v10 = vrot.slane %v1728_v18, 4 }
 0x3ee   : > { %v1730_v16 = vadd.f32 %v1729_v10, %v1728_v18 }
 0x3f0   : > { %v1731_v20 = vrot.slane %v1730_v16, 2 }
 0x3f2   : > { %v1732_v52 = vadd.f32 %v1731_v20, %v1730_v16 }
 0x3f4   : > { %v1733_v21 = vrot.slane %v1732_v52, 1 }
 0x3f6   : > { %v1734_v1 = vadd.f32 %v1733_v21, %v1732_v52  ;;  %1744 = sbr.rel (!%p1740_p1) target bundleno = 1561 (0x619), region = 88 }
 0x3f8   : > { %v1737_v26 = vadd.f32 %v1736_v24, %v1734_v1 }
 0x3fa   : > { %1739 = vst.msk [vmem:[%s1735_s16] sm:$0x1] %vm1738_vm2, %v1737_v26 }
 0x401   : > { %v1750_v17 = vld [vmem:[#allocation2 + $0x1] sm:$0x1]  ;;  %v1745_v31 = vld [vmem:[#allocation2] sm:$0x1] }
 0x402   : > { %v1751_v22 = vmul.f32 0.0625, %v1750_v17  ;;  %v1746_v36 = vmul.f32 0.0625, %v1745_v31 }
 0x404   : > { %2027 = vmatmul.msk.f32.vlgmr.msra.gmra.mxu0 %vm1467_vm11, %v1751_v22  ;;  %2028 = vmatmul.msk.f32.vlgmr.msra.gmra.mxu1 %vm1467_vm11, %v1746_v36 }
 0x481   : > { %v1774_v12 = vpop.f32.mrf.mxu0  ;;  %v1797_v60 = vpop.f32.mrf.mxu1 }
 0x482   : > { %v1798_v40 = vadd.f32 %v1797_v60, %v1774_v12 }
 0x484   : > { %v1801_v42 = vadd.f32 %v1800_v39, %v1798_v40 }
 0x486   : > { %v1802_v43 = vmax.f32 %v1801_v42, 0.0 }
 0x488   : > { %2029 = vmatmul.msk.f32.vlgmr.msra.gmra.mxu2 %vm1467_vm11, %v1802_v43 }
 0x50b   : > { %v1826_v32 = vpop.f32.mrf.mxu2 }
 0x50c   : > { %v1827_v56 = vadd.f32 %v1826_v32, %v1805_v55 }
 0x50e   : > { %v1829_v13 = vmax.f32 %v1827_v56, 0.0 }
 0x510   : > { %2030 = vmatmul.msk.f32.vlgmr.msra.gmra.mxu3 %vm1467_vm11, %v1829_v13 }
 0x593   : > { %v1853_v9 = vpop.f32.mrf.mxu3 }
 0x594   : > { %v1854_v11 = vadd.f32 %v1853_v9, %v1832_v50 }
 0x596   : > { %v1856_v44 = vmax.f32 %v1854_v11, 0.0 }
 0x598   : > { %2031 = vmatmul.msk.f32.vlgmr.msrb.gmra.mxu0 %vm1467_vm11, %v1856_v44 }
 0x615   : > { %v1880_v46 = vpop.f32.mrf.mxu0 }
 0x616   : > { %v1881_v58 = vadd.f32 %v1880_v46, %v1859_v45 }
 0x618   : > { %1884 = vst.msk [vmem:[%s2453_s15] sm:$0x1] %vm1883_vm3, %v1881_v58 }
 0x619 PF: > { %s2884_s18 = sld [smem:[#allocation18_spill]]  ;;  %s1896_s29 = sshll.u32 %s2453_s15, 4  ;;  %s1897_s29 = int_to_ptr.vmem [resolvable:$true] %s1896_s29 }
 0x61a   : > { %s1886_s20 = scalar_lea.sflag [#allocation4], %s543_s27 }
 0x61f   : > { %s2885_s30 = smov %s2884_s18  ;;  %s1894_s21 = scalar_lea.hbm %s2884_s18, %s2265_s22 }
 0x620   : > { %s1898_s16 = sshll.u32 %s1894_s21, 4  ;;  %s2203_s28 = scalar_lea.hbm %s2885_s30, 2  ;;  %s1899_s16 = int_to_ptr.hbm [resolvable:$true] %s1898_s16 }
 0x621   : > { %s2197_s24 = sshra.s32 %s1899_s16, 4  ;;  %s2198_s24 = int_to_ptr.hbm [resolvable:$true] %s2197_s24 }
 0x622   : > { %s2199_s25 = scalar_lea.hbm %s2198_s24, 1  ;;  %p2204_p6 = scmp.lt.s32.totalorder %s2198_s24, %s2885_s30 }
 0x623   : > { %p2200_p2 = scmp.ne.s32.totalorder %s2198_s24, %s2199_s25  ;;  %p2205_p7 = scmp.lt.s32.totalorder %s2203_s28, %s2199_s25 }
 0x625   : > { %p2201_p4 = pnand %p2200_p2, %p2417_p3  ;;  %p2206_p8 = por %p2205_p7, %p2204_p6 }
 0x627   : > { %p2202_p5 = pneg %p2201_p4 }
 0x629   : > { %p2207_p10 = pnand %p2206_p8, %p2202_p5 }
 0x62b   : > { %2210 = shalt.err (!%p2207_p10)
}
 0x62c   : > { %2036 = dma.vmem_to_hbm [thread:$0]  (%p2417_p3), %s1897_s29, 16, %s1899_s16, %s1886_s20  }
 0x62d PF: > { %s2887_s15 = sld [smem:[#allocation10_spill]] }
 0x62e   : > { %s2888_s22 = sld [smem:[#allocation6_spill]] }
 0x633   : > { %p2042_p11 = scmp.ge.s32.totalorder %s2887_s15, 2 }
 0x634   : > { %s1910_s18 = sand.u32 1, %s2888_s22  }
 0x635   : > { %p2039_p12 = pnand %p2042_p11, %p2427_p9  ;;  %s1911_s0 = scalar_lea.sflag [#allocation4], %s1910_s18 }
 0x637   : > { %p2040_p13 = pneg %p2039_p12 }
 0x639   : > { %2244 = dma.done.wait (%p2040_p13), %s1911_s0, 16  }
 0x63a   : > { %2246 = vsyncadd (%p2040_p13), %s1911_s0, 4294967280  ;;  %s28_s25 = sadd.s32 1, %s2887_s15   ;;  %s2890_s1 = sld [smem:[#allocation7_spill]] }
 0x63b   : > { %p25_p0 = scmp.ge.s32.totalorder %s28_s25, 6   ;;  %s2891_s20 = sld [smem:[#allocation15_spill]] }
 0x63c   : > { %s2892_s21 = sld [smem:[#allocation8_spill]]  ;;  %s2896_s18 = smov %s2253_s19 }
 0x63d   : > { %s2893_s22 = sld [smem:[#allocation9_spill]]  ;;  %27 = sbr.rel (!%p25_p0) target bundleno = 9 (0x9), region = 128 }
 0x63e   : > { %s2894_s23 = sld [smem:[#allocation11_spill]] }
 0x63f   : > { %s2895_s24 = sld [smem:[#allocation13_spill]] }
 0x640   : > { %s2897_s19 = smov %s2890_s1 }
 0x642   :  { %1916 = vsyncpa [#allocation4], 1 }
 0x643   :  { %1918 = vsyncpa [#allocation4 + $0x1], 1 }

</bundles_post_ra>
